<compile_context>
chip_gen: v7x
topology: tpu7x:2x2x1
jax: 0.10.0
libtpu: 0.0.40
codegen_flags: <defaults>
</compile_context>

<pallas_src>
import functools

import jax
import jax.numpy as jnp
from jax import lax
from jax.experimental import pallas as pl
from jax.experimental.pallas import tpu as pltpu


def _qkv_attention_kernel(xkv_ref, wqT_ref, xid_ref, p_ref, *,
                          K, E, TQ, approx_recip):
    """One (batch b, query-tile i) grid step.

    xkv_ref : (1, L, E)     full sequence of batch b (queries, keys and values)
    wqT_ref : (E, K*E)      attq.weight.T, pre-scaled by 1/sqrt(E)
    xid_ref : (1, TQ, K*E)  output tile
    p_ref   : (1, TQ, K, L) attention-probability tile
    """
    row0 = pl.multiple_of(pl.program_id(1) * TQ, TQ)
    x_kv = xkv_ref[0]                                # (L, E)  compute dtype
    x_q = xkv_ref[0, pl.ds(row0, TQ), :]             # (TQ, E) query rows of this tile
    cd = x_kv.dtype

    # All-head query projection in one lane-dense MXU call (N = K*E).
    # 1/sqrt(E) is already folded into the weight.
    q_all = jnp.dot(x_q, wqT_ref[...],
                    preferred_element_type=jnp.float32)          # (TQ, K*E) f32

    y_heads = []
    for k in range(K):                 # static per-head loop: no sublane restacking
        q_k = q_all[:, k * E:(k + 1) * E].astype(cd)             # (TQ, E)

        # scores[i, j] = <q_k[i], x_kv[j]>; contract the last dims of both
        # operands so the MXU consumes the RHS transposed (no XLU transpose).
        s = lax.dot_general(q_k, x_kv,
                            dimension_numbers=(((1,), (1,)), ((), ())),
                            preferred_element_type=jnp.float32)  # (TQ, L) f32

        # Softmax over the key axis (f32 on VPU/EUP).
        s = s - jnp.max(s, axis=-1, keepdims=True)
        es = jnp.exp(s)
        denom = jnp.sum(es, axis=-1, keepdims=True)
        if approx_recip:
            p = es * pl.reciprocal(denom, approx=True)           # EUP slot
        else:
            p = es / denom

        # Attention probabilities for this head (lane-dense along L).
        p_ref[0, :, k, :] = p.astype(p_ref.dtype)

        # Attention-weighted sum of the raw sequence (values).
        y = jnp.dot(p.astype(cd), x_kv,
                    preferred_element_type=jnp.float32)          # (TQ, E) f32
        if E % 128 == 0:
            # Lane-aligned, unmasked per-head store.
            xid_ref[0, :, k * E:(k + 1) * E] = y.astype(xid_ref.dtype)
        else:
            y_heads.append(y)

    if E % 128 != 0:
        # E-wide stores would be lane-masked; one lane-dense (TQ, K*E) store instead.
        xid_ref[0] = jnp.concatenate(y_heads, axis=-1).astype(xid_ref.dtype)


def _vmem_capacity_bytes():
    try:
        return int(pltpu.get_tpu_info().vmem_capacity_bytes)
    except Exception:
        return 64 * 1024 * 1024      # conservative default (v7x per-TC VMEM)


def _pad8(n):
    return -(-n // 8) * 8


def _tile_vmem_bytes(TQ, L, K, E, bpe_in, bpe_out, bpe_p):
    """Rough per-grid-step VMEM footprint (pipeline buffers + f32 working set)."""
    io = (2 * L * E * bpe_in                 # x_kv block, double-buffered
          + E * K * E * bpe_in               # weight, single-buffered
          + 2 * TQ * K * E * bpe_out         # xid output block, double-buffered
          + 2 * TQ * _pad8(K) * L * bpe_p)   # pijk block (K pads to 8 sublanes)
    work = 4 * (TQ * K * E                   # q_all (f32)
                + 3 * TQ * L                 # per-head scores / exp / p (f32)
                + 2 * TQ * K * E)            # y heads + lane-concat staging (f32)
    return io + work


def _pick_block_q(L, K, E, bpe_in, bpe_out, bpe_p, budget):
    """Largest query tile whose estimated VMEM footprint fits the budget."""
    cands = [t for t in (1024, 512, 256, 128, 64, 32, 16, 8)
             if t <= L and L % t == 0]
    if not cands:
        cands = [L]   # no multiple-of-8 divisor (or L < 8): whole sequence as one tile
    for tq in cands:
        if _tile_vmem_bytes(tq, L, K, E, bpe_in, bpe_out, bpe_p) <= budget:
            return tq
    return cands[-1]


def qkv_attention(xsa, attq_w, *, kernel_size, block_q=None,
                  compute_dtype=jnp.bfloat16, p_dtype=None):
    """Pallas forward of QKV_Attention.  Returns (xid, pijk)."""
    B, L, E = xsa.shape
    K = kernel_size
    assert attq_w.shape == (K * E, E)

    out_dtype = xsa.dtype
    exact = jnp.dtype(compute_dtype) == jnp.dtype(jnp.float32)
    if p_dtype is None:
        # pijk writeback is the dominant O(B*K*L^2) HBM stream: bf16 on the fast
        # path halves it (and its padded output buffer); exact dtype on f32 path.
        p_dtype = out_dtype if exact else jnp.bfloat16

    bpe_in = jnp.dtype(compute_dtype).itemsize
    bpe_out = jnp.dtype(out_dtype).itemsize
    bpe_p = jnp.dtype(p_dtype).itemsize

    cap = _vmem_capacity_bytes()
    tile_budget = int(0.7 * cap)
    TQ = (_pick_block_q(L, K, E, bpe_in, bpe_out, bpe_p, tile_budget)
          if block_q is None else block_q)
    assert L % TQ == 0, (L, TQ)

    est = _tile_vmem_bytes(TQ, L, K, E, bpe_in, bpe_out, bpe_p)
    vmem_limit = int(min(0.9 * cap, max(32 * 1024 * 1024, 2 * est)))

    # Fold 1/sqrt(E) into the weight once (reused by every grid step), before
    # the compute-dtype cast.
    wqT = (attq_w.T * (1.0 / (E ** 0.5))).astype(compute_dtype)   # (E, K*E)
    x_c = xsa.astype(compute_dtype)

    kernel = functools.partial(_qkv_attention_kernel, K=K, E=E, TQ=TQ,
                               approx_recip=not exact)

    def build(single_buffer_weight):
        w_kwargs = {}
        if single_buffer_weight:
            # Weight block index never changes -> second pipeline buffer is dead VMEM.
            w_kwargs["pipeline_mode"] = pl.Buffered(1)
        grid_spec = pltpu.PrefetchScalarGridSpec(
            num_scalar_prefetch=0,
            grid=(B, L // TQ),   # B-major: megacore shards batches, x_kv stays resident
            in_specs=[
                pl.BlockSpec((1, L, E), lambda b, i: (b, 0, 0)),           # full sequence
                pl.BlockSpec((E, K * E), lambda b, i: (0, 0), **w_kwargs), # attq.weight.T
            ],
            out_specs=[
                pl.BlockSpec((1, TQ, K * E), lambda b, i: (b, i, 0)),      # xid
                pl.BlockSpec((1, TQ, K, L), lambda b, i: (b, i, 0, 0)),    # pijk
            ],
        )
        return pl.pallas_call(
            kernel,
            out_shape=(
                jax.ShapeDtypeStruct((B, L, K * E), out_dtype),
                jax.ShapeDtypeStruct((B, L, K, L), p_dtype),
            ),
            grid_spec=grid_spec,
            compiler_params=pltpu.CompilerParams(
                dimension_semantics=("parallel", "parallel"),
                vmem_limit_bytes=vmem_limit),
        )

    try:
        return build(True)(x_c, wqT)
    except Exception:
        # Fallback if this JAX version rejects a single-buffered pipeline_mode.
        return build(False)(x_c, wqT)


def qkv_attention_ref(xsa, attq_w, *, kernel_size):
    """Pure-JAX transcription of the PyTorch forward, for verification."""
    B, L, E = xsa.shape
    K = kernel_size
    q = (xsa @ attq_w.T).reshape(B, L, K, E)
    h = jnp.einsum("bike,bje->bikj", q, xsa) / (E ** 0.5)
    p = jax.nn.softmax(h, axis=-1)
    y = jnp.einsum("bikj,bje->bike", p, xsa)
    return y.reshape(B, L, K * E), p


if __name__ == "__main__":
    # Module hyperparameters: embed_dim=E, kernel_size=K, kernel_dim==embed_dim.
    B, L, E, K = 2, 8, 32, 4

    key = jax.random.PRNGKey(0)
    k_x, k_q = jax.random.split(key, 2)

    xsa = jax.random.normal(k_x, (B, L, E), dtype=jnp.float32)

    # PyTorch-Linear-style uniform init for attq.weight (its bias is unused).
    bound = 1.0 / (E ** 0.5)
    attq_w = jax.random.uniform(k_q, (K * E, E), jnp.float32, -bound, bound)

    ref_xid, ref_p = qkv_attention_ref(xsa, attq_w, kernel_size=K)

    # Exact (float32 operand) path: exact divide, f32 pijk.
    xid32, p32 = qkv_attention(xsa, attq_w, kernel_size=K,
                               compute_dtype=jnp.float32)
    jax.block_until_ready((xid32, p32))
    assert xid32.shape == (B, L, K * E) and p32.shape == (B, L, K, L)
    assert jnp.allclose(xid32, ref_xid, rtol=1e-3, atol=1e-3), float(
        jnp.max(jnp.abs(xid32 - ref_xid)))
    assert jnp.allclose(p32, ref_p, rtol=1e-3, atol=1e-3), float(
        jnp.max(jnp.abs(p32 - ref_p)))

    # Default fast path: bf16 MXU operands, f32 accumulation/softmax, bf16 pijk.
    xid_bf, p_bf = qkv_attention(xsa, attq_w, kernel_size=K)
    jax.block_until_ready((xid_bf, p_bf))
    assert xid_bf.shape == (B, L, K * E) and p_bf.shape == (B, L, K, L)
    assert jnp.allclose(xid_bf, ref_xid, rtol=3e-2, atol=3e-2), float(
        jnp.max(jnp.abs(xid_bf - ref_xid)))
    p_bf32 = p_bf.astype(jnp.float32)
    assert jnp.allclose(p_bf32, ref_p, rtol=3e-2, atol=3e-2), float(
        jnp.max(jnp.abs(p_bf32 - ref_p)))

    print("KERNEL_OK")
</pallas_src>

<mosaic_0001>
module attributes {stable_mosaic.version = 11 : i64} {
  func.func @_qkv_attention_kernel(%arg0: i32, %arg1: i32, %arg2: memref<1x8x32xf32, #tpu.memory_space<vmem>>, %arg3: memref<32x128xf32, #tpu.memory_space<vmem>>, %arg4: memref<1x8x128xf32, #tpu.memory_space<vmem>>, %arg5: memref<1x8x4x8xf32, #tpu.memory_space<vmem>>) attributes {dimension_semantics = [#tpu.dimension_semantics<parallel>, #tpu.dimension_semantics<parallel>], iteration_bounds = array<i64: 2, 1>, scalar_prefetch = 0 : i64, scratch_operands = 0 : i64, tpu.core_type = #tpu.core_type<tc>, window_params = [{transform_indices = @transform_0, window_bounds = array<i64: 1, 8, 32>}, {pipeline_mode = #tpu.pipeline_mode<synchronous>, transform_indices = @transform_1, window_bounds = array<i64: 32, 128>}, {transform_indices = @transform_2, window_bounds = array<i64: 1, 8, 128>}, {transform_indices = @transform_3, window_bounds = array<i64: 1, 8, 4, 8>}]} {
    %c8_i32 = arith.constant 8 : i32
    %0 = arith.muli %arg1, %c8_i32 : i32
    %1 = tpu.assume_multiple %0, 8 : i32
    %c0 = arith.constant 0 : index
    %c0_0 = arith.constant 0 : index
    %c0_1 = arith.constant 0 : index
    %2 = vector.load %arg2[%c0, %c0_0, %c0_1] : memref<1x8x32xf32, #tpu.memory_space<vmem>>, vector<1x8x32xf32>
    %3 = vector.shape_cast %2 : vector<1x8x32xf32> to vector<8x32xf32>
    %c0_2 = arith.constant 0 : index
    %4 = arith.index_cast %1 : i32 to index
    %c0_3 = arith.constant 0 : index
    %5 = vector.load %arg2[%c0_2, %4, %c0_3] : memref<1x8x32xf32, #tpu.memory_space<vmem>>, vector<1x8x32xf32>
    %6 = vector.shape_cast %5 : vector<1x8x32xf32> to vector<8x32xf32>
    %c0_4 = arith.constant 0 : index
    %c0_5 = arith.constant 0 : index
    %7 = vector.load %arg3[%c0_4, %c0_5] : memref<32x128xf32, #tpu.memory_space<vmem>>, vector<32x128xf32>
    %cst = arith.constant dense<0.000000e+00> : vector<8x128xf32>
    %8 = tpu.matmul %6, %7, %cst {dimension_numbers = #tpu.dot_dimension_numbers<[1], [0], [0], [1], [0, 0, 1, 1], [], []>} : vector<8x32xf32>, vector<32x128xf32>, vector<8x128xf32> -> vector<8x128xf32>
    %9 = vector.extract_strided_slice %8 {offsets = [0, 0], sizes = [8, 32], strides = [1, 1]} : vector<8x128xf32> to vector<8x32xf32>
    %cst_6 = arith.constant dense<0.000000e+00> : vector<8x8xf32>
    %10 = tpu.matmul %9, %3, %cst_6 {dimension_numbers = #tpu.dot_dimension_numbers<[1], [1], [0], [0], [0, 0, 1, 0], [], []>} : vector<8x32xf32>, vector<8x32xf32>, vector<8x8xf32> -> vector<8x8xf32>
    %cst_7 = arith.constant dense<0xFF800000> : vector<8xf32>
    %11 = vector.multi_reduction <maximumf>, %10, %cst_7 [1] : vector<8x8xf32> to vector<8xf32>
    %12 = vector.shape_cast %11 : vector<8xf32> to vector<8x1xf32>
    %13 = vector.broadcast %12 : vector<8x1xf32> to vector<8x8xf32>
    %14 = arith.subf %10, %13 : vector<8x8xf32>
    %15 = math.exp %14 : vector<8x8xf32>
    %cst_8 = arith.constant dense<0.000000e+00> : vector<8xf32>
    %16 = vector.multi_reduction <add>, %15, %cst_8 [1] : vector<8x8xf32> to vector<8xf32>
    %17 = vector.shape_cast %16 : vector<8xf32> to vector<8x1xf32>
    %18 = vector.broadcast %17 : vector<8x1xf32> to vector<8x8xf32>
    %19 = arith.divf %15, %18 : vector<8x8xf32>
    %c0_9 = arith.constant 0 : index
    %c0_10 = arith.constant 0 : index
    %c0_11 = arith.constant 0 : index
    %c0_12 = arith.constant 0 : index
    %20 = vector.load %arg5[%c0_9, %c0_10, %c0_11, %c0_12] : memref<1x8x4x8xf32, #tpu.memory_space<vmem>>, vector<1x8x1x8xf32>
    %21 = vector.shape_cast %20 : vector<1x8x1x8xf32> to vector<8x8xf32>
    %22 = vector.shape_cast %19 : vector<8x8xf32> to vector<1x8x1x8xf32>
    tpu.vector_store %arg5[%c0_9, %c0_10, %c0_11, %c0_12], %22 {strides = array<i32>} : memref<1x8x4x8xf32, #tpu.memory_space<vmem>>, vector<1x8x1x8xf32>,
    %cst_13 = arith.constant dense<0.000000e+00> : vector<8x32xf32>
    %23 = tpu.matmul %19, %3, %cst_13 {dimension_numbers = #tpu.dot_dimension_numbers<[1], [0], [0], [1], [0, 0, 1, 1], [], []>} : vector<8x8xf32>, vector<8x32xf32>, vector<8x32xf32> -> vector<8x32xf32>
    %24 = vector.extract_strided_slice %8 {offsets = [0, 32], sizes = [8, 32], strides = [1, 1]} : vector<8x128xf32> to vector<8x32xf32>
    %cst_14 = arith.constant dense<0.000000e+00> : vector<8x8xf32>
    %25 = tpu.matmul %24, %3, %cst_14 {dimension_numbers = #tpu.dot_dimension_numbers<[1], [1], [0], [0], [0, 0, 1, 0], [], []>} : vector<8x32xf32>, vector<8x32xf32>, vector<8x8xf32> -> vector<8x8xf32>
    %cst_15 = arith.constant dense<0xFF800000> : vector<8xf32>
    %26 = vector.multi_reduction <maximumf>, %25, %cst_15 [1] : vector<8x8xf32> to vector<8xf32>
    %27 = vector.shape_cast %26 : vector<8xf32> to vector<8x1xf32>
    %28 = vector.broadcast %27 : vector<8x1xf32> to vector<8x8xf32>
    %29 = arith.subf %25, %28 : vector<8x8xf32>
    %30 = math.exp %29 : vector<8x8xf32>
    %cst_16 = arith.constant dense<0.000000e+00> : vector<8xf32>
    %31 = vector.multi_reduction <add>, %30, %cst_16 [1] : vector<8x8xf32> to vector<8xf32>
    %32 = vector.shape_cast %31 : vector<8xf32> to vector<8x1xf32>
    %33 = vector.broadcast %32 : vector<8x1xf32> to vector<8x8xf32>
    %34 = arith.divf %30, %33 : vector<8x8xf32>
    %c0_17 = arith.constant 0 : index
    %c0_18 = arith.constant 0 : index
    %c1 = arith.constant 1 : index
    %c0_19 = arith.constant 0 : index
    %35 = vector.load %arg5[%c0_17, %c0_18, %c1, %c0_19] : memref<1x8x4x8xf32, #tpu.memory_space<vmem>>, vector<1x8x1x8xf32>
    %36 = vector.shape_cast %35 : vector<1x8x1x8xf32> to vector<8x8xf32>
    %37 = vector.shape_cast %34 : vector<8x8xf32> to vector<1x8x1x8xf32>
    tpu.vector_store %arg5[%c0_17, %c0_18, %c1, %c0_19], %37 {strides = array<i32>} : memref<1x8x4x8xf32, #tpu.memory_space<vmem>>, vector<1x8x1x8xf32>,
    %cst_20 = arith.constant dense<0.000000e+00> : vector<8x32xf32>
    %38 = tpu.matmul %34, %3, %cst_20 {dimension_numbers = #tpu.dot_dimension_numbers<[1], [0], [0], [1], [0, 0, 1, 1], [], []>} : vector<8x8xf32>, vector<8x32xf32>, vector<8x32xf32> -> vector<8x32xf32>
    %39 = vector.extract_strided_slice %8 {offsets = [0, 64], sizes = [8, 32], strides = [1, 1]} : vector<8x128xf32> to vector<8x32xf32>
    %cst_21 = arith.constant dense<0.000000e+00> : vector<8x8xf32>
    %40 = tpu.matmul %39, %3, %cst_21 {dimension_numbers = #tpu.dot_dimension_numbers<[1], [1], [0], [0], [0, 0, 1, 0], [], []>} : vector<8x32xf32>, vector<8x32xf32>, vector<8x8xf32> -> vector<8x8xf32>
    %cst_22 = arith.constant dense<0xFF800000> : vector<8xf32>
    %41 = vector.multi_reduction <maximumf>, %40, %cst_22 [1] : vector<8x8xf32> to vector<8xf32>
    %42 = vector.shape_cast %41 : vector<8xf32> to vector<8x1xf32>
    %43 = vector.broadcast %42 : vector<8x1xf32> to vector<8x8xf32>
    %44 = arith.subf %40, %43 : vector<8x8xf32>
    %45 = math.exp %44 : vector<8x8xf32>
    %cst_23 = arith.constant dense<0.000000e+00> : vector<8xf32>
    %46 = vector.multi_reduction <add>, %45, %cst_23 [1] : vector<8x8xf32> to vector<8xf32>
    %47 = vector.shape_cast %46 : vector<8xf32> to vector<8x1xf32>
    %48 = vector.broadcast %47 : vector<8x1xf32> to vector<8x8xf32>
    %49 = arith.divf %45, %48 : vector<8x8xf32>
    %c0_24 = arith.constant 0 : index
    %c0_25 = arith.constant 0 : index
    %c2 = arith.constant 2 : index
    %c0_26 = arith.constant 0 : index
    %50 = vector.load %arg5[%c0_24, %c0_25, %c2, %c0_26] : memref<1x8x4x8xf32, #tpu.memory_space<vmem>>, vector<1x8x1x8xf32>
    %51 = vector.shape_cast %50 : vector<1x8x1x8xf32> to vector<8x8xf32>
    %52 = vector.shape_cast %49 : vector<8x8xf32> to vector<1x8x1x8xf32>
    tpu.vector_store %arg5[%c0_24, %c0_25, %c2, %c0_26], %52 {strides = array<i32>} : memref<1x8x4x8xf32, #tpu.memory_space<vmem>>, vector<1x8x1x8xf32>,
    %cst_27 = arith.constant dense<0.000000e+00> : vector<8x32xf32>
    %53 = tpu.matmul %49, %3, %cst_27 {dimension_numbers = #tpu.dot_dimension_numbers<[1], [0], [0], [1], [0, 0, 1, 1], [], []>} : vector<8x8xf32>, vector<8x32xf32>, vector<8x32xf32> -> vector<8x32xf32>
    %54 = vector.extract_strided_slice %8 {offsets = [0, 96], sizes = [8, 32], strides = [1, 1]} : vector<8x128xf32> to vector<8x32xf32>
    %cst_28 = arith.constant dense<0.000000e+00> : vector<8x8xf32>
    %55 = tpu.matmul %54, %3, %cst_28 {dimension_numbers = #tpu.dot_dimension_numbers<[1], [1], [0], [0], [0, 0, 1, 0], [], []>} : vector<8x32xf32>, vector<8x32xf32>, vector<8x8xf32> -> vector<8x8xf32>
    %cst_29 = arith.constant dense<0xFF800000> : vector<8xf32>
    %56 = vector.multi_reduction <maximumf>, %55, %cst_29 [1] : vector<8x8xf32> to vector<8xf32>
    %57 = vector.shape_cast %56 : vector<8xf32> to vector<8x1xf32>
    %58 = vector.broadcast %57 : vector<8x1xf32> to vector<8x8xf32>
    %59 = arith.subf %55, %58 : vector<8x8xf32>
    %60 = math.exp %59 : vector<8x8xf32>
    %cst_30 = arith.constant dense<0.000000e+00> : vector<8xf32>
    %61 = vector.multi_reduction <add>, %60, %cst_30 [1] : vector<8x8xf32> to vector<8xf32>
    %62 = vector.shape_cast %61 : vector<8xf32> to vector<8x1xf32>
    %63 = vector.broadcast %62 : vector<8x1xf32> to vector<8x8xf32>
    %64 = arith.divf %60, %63 : vector<8x8xf32>
    %c0_31 = arith.constant 0 : index
    %c0_32 = arith.constant 0 : index
    %c3 = arith.constant 3 : index
    %c0_33 = arith.constant 0 : index
    %65 = vector.load %arg5[%c0_31, %c0_32, %c3, %c0_33] : memref<1x8x4x8xf32, #tpu.memory_space<vmem>>, vector<1x8x1x8xf32>
    %66 = vector.shape_cast %65 : vector<1x8x1x8xf32> to vector<8x8xf32>
    %67 = vector.shape_cast %64 : vector<8x8xf32> to vector<1x8x1x8xf32>
    tpu.vector_store %arg5[%c0_31, %c0_32, %c3, %c0_33], %67 {strides = array<i32>} : memref<1x8x4x8xf32, #tpu.memory_space<vmem>>, vector<1x8x1x8xf32>,
    %cst_34 = arith.constant dense<0.000000e+00> : vector<8x32xf32>
    %68 = tpu.matmul %64, %3, %cst_34 {dimension_numbers = #tpu.dot_dimension_numbers<[1], [0], [0], [1], [0, 0, 1, 1], [], []>} : vector<8x8xf32>, vector<8x32xf32>, vector<8x32xf32> -> vector<8x32xf32>
    %69 = tpu.concatenate %23, %38, %53, %68 in 1 : vector<8x32xf32>, vector<8x32xf32>, vector<8x32xf32>, vector<8x32xf32> -> vector<8x128xf32>
    %c0_35 = arith.constant 0 : index
    %c0_36 = arith.constant 0 : index
    %c0_37 = arith.constant 0 : index
    %70 = vector.load %arg4[%c0_35, %c0_36, %c0_37] : memref<1x8x128xf32, #tpu.memory_space<vmem>>, vector<1x8x128xf32>
    %71 = vector.shape_cast %70 : vector<1x8x128xf32> to vector<8x128xf32>
    %72 = vector.shape_cast %69 : vector<8x128xf32> to vector<1x8x128xf32>
    tpu.vector_store %arg4[%c0_35, %c0_36, %c0_37], %72 {strides = array<i32>} : memref<1x8x128xf32, #tpu.memory_space<vmem>>, vector<1x8x128xf32>,
    return
  }
  func.func @transform_0(%arg0: i32, %arg1: i32) -> (i32, i32, i32) {
    %c0_i32 = arith.constant 0 : i32
    %c0_i32_0 = arith.constant 0 : i32
    %c0_i32_1 = arith.constant 0 : i32
    return %arg0, %c0_i32, %c0_i32_0 : i32, i32, i32
  }
  func.func @transform_1(%arg0: i32, %arg1: i32) -> (i32, i32) {
    %c0_i32 = arith.constant 0 : i32
    %c0_i32_0 = arith.constant 0 : i32
    %c0_i32_1 = arith.constant 0 : i32
    return %c0_i32, %c0_i32_0 : i32, i32
  }
  func.func @transform_2(%arg0: i32, %arg1: i32) -> (i32, i32, i32) {
    %c0_i32 = arith.constant 0 : i32
    %c0_i32_0 = arith.constant 0 : i32
    return %arg0, %arg1, %c0_i32 : i32, i32, i32
  }
  func.func @transform_3(%arg0: i32, %arg1: i32) -> (i32, i32, i32, i32) {
    %c0_i32 = arith.constant 0 : i32
    %c0_i32_0 = arith.constant 0 : i32
    %c0_i32_1 = arith.constant 0 : i32
    return %arg0, %arg1, %c0_i32, %c0_i32_0 : i32, i32, i32, i32
  }
}

module attributes {stable_mosaic.version = 11 : i64} {
  func.func @_qkv_attention_kernel(%arg0: i32, %arg1: i32, %arg2: memref<1x8x32xf32, #tpu.memory_space<vmem>>, %arg3: memref<32x128xf32, #tpu.memory_space<vmem>>, %arg4: memref<1x8x128xf32, #tpu.memory_space<vmem>>, %arg5: memref<1x8x4x8xf32, #tpu.memory_space<vmem>>) attributes {dimension_semantics = [#tpu.dimension_semantics<parallel>, #tpu.dimension_semantics<parallel>], iteration_bounds = array<i64: 2, 1>, scalar_prefetch = 0 : i64, scratch_operands = 0 : i64, tpu.core_type = #tpu.core_type<tc>, window_params = [{transform_indices = @transform_0, window_bounds = array<i64: 1, 8, 32>}, {pipeline_mode = #tpu.pipeline_mode<synchronous>, transform_indices = @transform_1, window_bounds = array<i64: 32, 128>}, {transform_indices = @transform_2, window_bounds = array<i64: 1, 8, 128>}, {transform_indices = @transform_3, window_bounds = array<i64: 1, 8, 4, 8>}]} {
    %c8_i32 = arith.constant 8 : i32
    %0 = arith.muli %arg1, %c8_i32 : i32
    %1 = tpu.assume_multiple %0, 8 : i32
    %c0 = arith.constant 0 : index
    %c0_0 = arith.constant 0 : index
    %c0_1 = arith.constant 0 : index
    %2 = vector.load %arg2[%c0, %c0_0, %c0_1] : memref<1x8x32xf32, #tpu.memory_space<vmem>>, vector<1x8x32xf32>
    %3 = vector.shape_cast %2 : vector<1x8x32xf32> to vector<8x32xf32>
    %c0_2 = arith.constant 0 : index
    %4 = arith.index_cast %1 : i32 to index
    %c0_3 = arith.constant 0 : index
    %5 = vector.load %arg2[%c0_2, %4, %c0_3] : memref<1x8x32xf32, #tpu.memory_space<vmem>>, vector<1x8x32xf32>
    %6 = vector.shape_cast %5 : vector<1x8x32xf32> to vector<8x32xf32>
    %c0_4 = arith.constant 0 : index
    %c0_5 = arith.constant 0 : index
    %7 = vector.load %arg3[%c0_4, %c0_5] : memref<32x128xf32, #tpu.memory_space<vmem>>, vector<32x128xf32>
    %cst = arith.constant dense<0.000000e+00> : vector<8x128xf32>
    %8 = tpu.matmul %6, %7, %cst {dimension_numbers = #tpu.dot_dimension_numbers<[1], [0], [0], [1], [0, 0, 1, 1], [], []>} : vector<8x32xf32>, vector<32x128xf32>, vector<8x128xf32> -> vector<8x128xf32>
    %9 = vector.extract_strided_slice %8 {offsets = [0, 0], sizes = [8, 32], strides = [1, 1]} : vector<8x128xf32> to vector<8x32xf32>
    %cst_6 = arith.constant dense<0.000000e+00> : vector<8x8xf32>
    %10 = tpu.matmul %9, %3, %cst_6 {dimension_numbers = #tpu.dot_dimension_numbers<[1], [1], [0], [0], [0, 0, 1, 0], [], []>} : vector<8x32xf32>, vector<8x32xf32>, vector<8x8xf32> -> vector<8x8xf32>
    %cst_7 = arith.constant dense<0xFF800000> : vector<8xf32>
    %11 = vector.multi_reduction <maximumf>, %10, %cst_7 [1] : vector<8x8xf32> to vector<8xf32>
    %12 = vector.shape_cast %11 : vector<8xf32> to vector<8x1xf32>
    %13 = vector.broadcast %12 : vector<8x1xf32> to vector<8x8xf32>
    %14 = arith.subf %10, %13 : vector<8x8xf32>
    %15 = math.exp %14 : vector<8x8xf32>
    %cst_8 = arith.constant dense<0.000000e+00> : vector<8xf32>
    %16 = vector.multi_reduction <add>, %15, %cst_8 [1] : vector<8x8xf32> to vector<8xf32>
    %17 = vector.shape_cast %16 : vector<8xf32> to vector<8x1xf32>
    %18 = vector.broadcast %17 : vector<8x1xf32> to vector<8x8xf32>
    %19 = arith.divf %15, %18 : vector<8x8xf32>
    %c0_9 = arith.constant 0 : index
    %c0_10 = arith.constant 0 : index
    %c0_11 = arith.constant 0 : index
    %c0_12 = arith.constant 0 : index
    %20 = vector.load %arg5[%c0_9, %c0_10, %c0_11, %c0_12] : memref<1x8x4x8xf32, #tpu.memory_space<vmem>>, vector<1x8x1x8xf32>
    %21 = vector.shape_cast %20 : vector<1x8x1x8xf32> to vector<8x8xf32>
    %22 = vector.shape_cast %19 : vector<8x8xf32> to vector<1x8x1x8xf32>
    tpu.vector_store %arg5[%c0_9, %c0_10, %c0_11, %c0_12], %22 {strides = array<i32>} : memref<1x8x4x8xf32, #tpu.memory_space<vmem>>, vector<1x8x1x8xf32>,
    %cst_13 = arith.constant dense<0.000000e+00> : vector<8x32xf32>
    %23 = tpu.matmul %19, %3, %cst_13 {dimension_numbers = #tpu.dot_dimension_numbers<[1], [0], [0], [1], [0, 0, 1, 1], [], []>} : vector<8x8xf32>, vector<8x32xf32>, vector<8x32xf32> -> vector<8x32xf32>
    %24 = vector.extract_strided_slice %8 {offsets = [0, 32], sizes = [8, 32], strides = [1, 1]} : vector<8x128xf32> to vector<8x32xf32>
    %cst_14 = arith.constant dense<0.000000e+00> : vector<8x8xf32>
    %25 = tpu.matmul %24, %3, %cst_14 {dimension_numbers = #tpu.dot_dimension_numbers<[1], [1], [0], [0], [0, 0, 1, 0], [], []>} : vector<8x32xf32>, vector<8x32xf32>, vector<8x8xf32> -> vector<8x8xf32>
    %cst_15 = arith.constant dense<0xFF800000> : vector<8xf32>
    %26 = vector.multi_reduction <maximumf>, %25, %cst_15 [1] : vector<8x8xf32> to vector<8xf32>
    %27 = vector.shape_cast %26 : vector<8xf32> to vector<8x1xf32>
    %28 = vector.broadcast %27 : vector<8x1xf32> to vector<8x8xf32>
    %29 = arith.subf %25, %28 : vector<8x8xf32>
    %30 = math.exp %29 : vector<8x8xf32>
    %cst_16 = arith.constant dense<0.000000e+00> : vector<8xf32>
    %31 = vector.multi_reduction <add>, %30, %cst_16 [1] : vector<8x8xf32> to vector<8xf32>
    %32 = vector.shape_cast %31 : vector<8xf32> to vector<8x1xf32>
    %33 = vector.broadcast %32 : vector<8x1xf32> to vector<8x8xf32>
    %34 = arith.divf %30, %33 : vector<8x8xf32>
    %c0_17 = arith.constant 0 : index
    %c0_18 = arith.constant 0 : index
    %c1 = arith.constant 1 : index
    %c0_19 = arith.constant 0 : index
    %35 = vector.load %arg5[%c0_17, %c0_18, %c1, %c0_19] : memref<1x8x4x8xf32, #tpu.memory_space<vmem>>, vector<1x8x1x8xf32>
    %36 = vector.shape_cast %35 : vector<1x8x1x8xf32> to vector<8x8xf32>
    %37 = vector.shape_cast %34 : vector<8x8xf32> to vector<1x8x1x8xf32>
    tpu.vector_store %arg5[%c0_17, %c0_18, %c1, %c0_19], %37 {strides = array<i32>} : memref<1x8x4x8xf32, #tpu.memory_space<vmem>>, vector<1x8x1x8xf32>,
    %cst_20 = arith.constant dense<0.000000e+00> : vector<8x32xf32>
    %38 = tpu.matmul %34, %3, %cst_20 {dimension_numbers = #tpu.dot_dimension_numbers<[1], [0], [0], [1], [0, 0, 1, 1], [], []>} : vector<8x8xf32>, vector<8x32xf32>, vector<8x32xf32> -> vector<8x32xf32>
    %39 = vector.extract_strided_slice %8 {offsets = [0, 64], sizes = [8, 32], strides = [1, 1]} : vector<8x128xf32> to vector<8x32xf32>
    %cst_21 = arith.constant dense<0.000000e+00> : vector<8x8xf32>
    %40 = tpu.matmul %39, %3, %cst_21 {dimension_numbers = #tpu.dot_dimension_numbers<[1], [1], [0], [0], [0, 0, 1, 0], [], []>} : vector<8x32xf32>, vector<8x32xf32>, vector<8x8xf32> -> vector<8x8xf32>
    %cst_22 = arith.constant dense<0xFF800000> : vector<8xf32>
    %41 = vector.multi_reduction <maximumf>, %40, %cst_22 [1] : vector<8x8xf32> to vector<8xf32>
    %42 = vector.shape_cast %41 : vector<8xf32> to vector<8x1xf32>
    %43 = vector.broadcast %42 : vector<8x1xf32> to vector<8x8xf32>
    %44 = arith.subf %40, %43 : vector<8x8xf32>
    %45 = math.exp %44 : vector<8x8xf32>
    %cst_23 = arith.constant dense<0.000000e+00> : vector<8xf32>
    %46 = vector.multi_reduction <add>, %45, %cst_23 [1] : vector<8x8xf32> to vector<8xf32>
    %47 = vector.shape_cast %46 : vector<8xf32> to vector<8x1xf32>
    %48 = vector.broadcast %47 : vector<8x1xf32> to vector<8x8xf32>
    %49 = arith.divf %45, %48 : vector<8x8xf32>
    %c0_24 = arith.constant 0 : index
    %c0_25 = arith.constant 0 : index
    %c2 = arith.constant 2 : index
    %c0_26 = arith.constant 0 : index
    %50 = vector.load %arg5[%c0_24, %c0_25, %c2, %c0_26] : memref<1x8x4x8xf32, #tpu.memory_space<vmem>>, vector<1x8x1x8xf32>
    %51 = vector.shape_cast %50 : vector<1x8x1x8xf32> to vector<8x8xf32>
    %52 = vector.shape_cast %49 : vector<8x8xf32> to vector<1x8x1x8xf32>
    tpu.vector_store %arg5[%c0_24, %c0_25, %c2, %c0_26], %52 {strides = array<i32>} : memref<1x8x4x8xf32, #tpu.memory_space<vmem>>, vector<1x8x1x8xf32>,
    %cst_27 = arith.constant dense<0.000000e+00> : vector<8x32xf32>
    %53 = tpu.matmul %49, %3, %cst_27 {dimension_numbers = #tpu.dot_dimension_numbers<[1], [0], [0], [1], [0, 0, 1, 1], [], []>} : vector<8x8xf32>, vector<8x32xf32>, vector<8x32xf32> -> vector<8x32xf32>
    %54 = vector.extract_strided_slice %8 {offsets = [0, 96], sizes = [8, 32], strides = [1, 1]} : vector<8x128xf32> to vector<8x32xf32>
    %cst_28 = arith.constant dense<0.000000e+00> : vector<8x8xf32>
    %55 = tpu.matmul %54, %3, %cst_28 {dimension_numbers = #tpu.dot_dimension_numbers<[1], [1], [0], [0], [0, 0, 1, 0], [], []>} : vector<8x32xf32>, vector<8x32xf32>, vector<8x8xf32> -> vector<8x8xf32>
    %cst_29 = arith.constant dense<0xFF800000> : vector<8xf32>
    %56 = vector.multi_reduction <maximumf>, %55, %cst_29 [1] : vector<8x8xf32> to vector<8xf32>
    %57 = vector.shape_cast %56 : vector<8xf32> to vector<8x1xf32>
    %58 = vector.broadcast %57 : vector<8x1xf32> to vector<8x8xf32>
    %59 = arith.subf %55, %58 : vector<8x8xf32>
    %60 = math.exp %59 : vector<8x8xf32>
    %cst_30 = arith.constant dense<0.000000e+00> : vector<8xf32>
    %61 = vector.multi_reduction <add>, %60, %cst_30 [1] : vector<8x8xf32> to vector<8xf32>
    %62 = vector.shape_cast %61 : vector<8xf32> to vector<8x1xf32>
    %63 = vector.broadcast %62 : vector<8x1xf32> to vector<8x8xf32>
    %64 = arith.divf %60, %63 : vector<8x8xf32>
    %c0_31 = arith.constant 0 : index
    %c0_32 = arith.constant 0 : index
    %c3 = arith.constant 3 : index
    %c0_33 = arith.constant 0 : index
    %65 = vector.load %arg5[%c0_31, %c0_32, %c3, %c0_33] : memref<1x8x4x8xf32, #tpu.memory_space<vmem>>, vector<1x8x1x8xf32>
    %66 = vector.shape_cast %65 : vector<1x8x1x8xf32> to vector<8x8xf32>
    %67 = vector.shape_cast %64 : vector<8x8xf32> to vector<1x8x1x8xf32>
    tpu.vector_store %arg5[%c0_31, %c0_32, %c3, %c0_33], %67 {strides = array<i32>} : memref<1x8x4x8xf32, #tpu.memory_space<vmem>>, vector<1x8x1x8xf32>,
    %cst_34 = arith.constant dense<0.000000e+00> : vector<8x32xf32>
    %68 = tpu.matmul %64, %3, %cst_34 {dimension_numbers = #tpu.dot_dimension_numbers<[1], [0], [0], [1], [0, 0, 1, 1], [], []>} : vector<8x8xf32>, vector<8x32xf32>, vector<8x32xf32> -> vector<8x32xf32>
    %69 = tpu.concatenate %23, %38, %53, %68 in 1 : vector<8x32xf32>, vector<8x32xf32>, vector<8x32xf32>, vector<8x32xf32> -> vector<8x128xf32>
    %c0_35 = arith.constant 0 : index
    %c0_36 = arith.constant 0 : index
    %c0_37 = arith.constant 0 : index
    %70 = vector.load %arg4[%c0_35, %c0_36, %c0_37] : memref<1x8x128xf32, #tpu.memory_space<vmem>>, vector<1x8x128xf32>
    %71 = vector.shape_cast %70 : vector<1x8x128xf32> to vector<8x128xf32>
    %72 = vector.shape_cast %69 : vector<8x128xf32> to vector<1x8x128xf32>
    tpu.vector_store %arg4[%c0_35, %c0_36, %c0_37], %72 {strides = array<i32>} : memref<1x8x128xf32, #tpu.memory_space<vmem>>, vector<1x8x128xf32>,
    return
  }
  func.func @transform_0(%arg0: i32, %arg1: i32) -> (i32, i32, i32) {
    %c0_i32 = arith.constant 0 : i32
    %c0_i32_0 = arith.constant 0 : i32
    %c0_i32_1 = arith.constant 0 : i32
    return %arg0, %c0_i32, %c0_i32_0 : i32, i32, i32
  }
  func.func @transform_1(%arg0: i32, %arg1: i32) -> (i32, i32) {
    %c0_i32 = arith.constant 0 : i32
    %c0_i32_0 = arith.constant 0 : i32
    %c0_i32_1 = arith.constant 0 : i32
    return %c0_i32, %c0_i32_0 : i32, i32
  }
  func.func @transform_2(%arg0: i32, %arg1: i32) -> (i32, i32, i32) {
    %c0_i32 = arith.constant 0 : i32
    %c0_i32_0 = arith.constant 0 : i32
    return %arg0, %arg1, %c0_i32 : i32, i32, i32
  }
  func.func @transform_3(%arg0: i32, %arg1: i32) -> (i32, i32, i32, i32) {
    %c0_i32 = arith.constant 0 : i32
    %c0_i32_0 = arith.constant 0 : i32
    %c0_i32_1 = arith.constant 0 : i32
    return %arg0, %arg1, %c0_i32, %c0_i32_0 : i32, i32, i32, i32
  }
}

</mosaic_0001>

<bundles_post_ra>
// kernel: tpu_custom_call.1
= control target key start
LH: loop header
LB: loop body
LE: loop exit
PB: predicated region body
PF: predicated region fallthrough
CT: control target
= control target key end

     0   :  { %9 = vsyncpa [#allocation3], 0  ;;  %s2231_s0 = inlined_call_operand.hbm [shape: f32[2,8,32], index: 0, kind: input, shape index: {}]   ;;  %s2232_s1 = inlined_call_operand.hbm [shape: f32[32,128], index: 1, kind: input, shape index: {}]   ;;  %s2233_s2 = inlined_call_operand.hbm [shape: f32[2,8,128], index: 2, kind: output, shape index: {0}]   ;;  %s2234_s3 = inlined_call_operand.hbm [shape: f32[2,8,4,8], index: 3, kind: output, shape index: {1}]  }
   0x1   :  { %11 = vsyncpa [#allocation3 + $0x1], 0 }
   0x2   :  { %12 = vsyncpa [#allocation6], 0 }
   0x3   :  { %13 = vsyncpa [#allocation4], 0 }
   0x4   :  { %15 = vsyncpa [#allocation4 + $0x1], 0 }
   0x5   :  { %16 = vsyncpa [#allocation9], 0 }
   0x6   :  { %18 = vsyncpa [#allocation9 + $0x1], 0  ;;  %s1816_s12 = smov 0   ;;  %s1818_s13 = smov 0  }
   0x7   :  { %s1820_s14 = smov 0   ;;  %s1822_s15 = smov 0  }
   0x8   :  { %s1824_s16 = smov 0   ;;  %s1826_s17 = smov 0  }
   0x9 LB: > { %s1389_s18 = sadd.s32 4294967295, %s1780_s17   ;;  %s1390_s19 = sadd.s32 4294967294, %s1780_s17   ;;  %s1780_s17 = sphi %s1826_s17, %s24_s17   ;;  %s1776_s16 = sphi %s1824_s16, %s2258_s16   ;;  %s1772_s15 = sphi %s1822_s15, %s2257_s15   ;;  %s1768_s14 = sphi %s1820_s14, %s2256_s14   ;;  %s1764_s13 = sphi %s1818_s13, %s2255_s13   ;;  %s1760_s12 = sphi %s1816_s12, %s2254_s12  }
   0xa   : > { %p56_p0 = scmp.ne.s32.totalorder %s1764_s13, %s1760_s12  ;;  %p1850_p1 = scmp.eq.s32.totalorder %s1389_s18, 0 }
   0xb   : > { %p1854_p2 = scmp.eq.s32.totalorder %s1389_s18, 1  ;;  %p109_p3 = scmp.eq.s32.totalorder %s1390_s19, 1 }
   0xc   : > { %s2239_s20 = scalar_select %p1850_p1, 1, 0 }
   0xd   : > { %s2240_s21 = scalar_select %p1854_p2, 1, 0 }
   0xe   : > { %p1860_p4 = por %p1850_p1, %p56_p0  ;;  %p1391_p5 = scmp.ge.s32.totalorder %s1780_s17, 1 }
   0xf   : > { %p1865_p6 = por %p109_p3, %p56_p0  ;;  %p144_p7 = scmp.lt.s32.totalorder %s1780_s17, 3 }
  0x10   : > { %s2241_s22 = scalar_select %p1860_p4, 1, 0 }
  0x11   : > { %s2242_s23 = scalar_select %p1865_p6, 1, 0 }
  0x12   : > { %p1870_p8 = pnand %p1391_p5, %p144_p7  ;;  %s1782_s25 = smov [#allocation5]  }
  0x13   : > { %s156_s26 = sshll.u32 %s1782_s25, 4  ;;  %s36_s28 = sadd.s32 1, %s1776_s16  ;;  %s157_s26 = int_to_ptr.vmem [resolvable:$true] %s156_s26 }
  0x14   : > { %s2243_s24 = scalar_select %p1870_p8, 1, 0 }
  0x15   : > { %p1510_p9 = pneg %p1870_p8  ;;  %s1604_s4 = scalar_lea.hbm %s2232_s1, 512 }
  0x16   : > { %p1605_p12 = scmp.ne.s32.totalorder %s2232_s1, %s1604_s4  ;;  %p1611_p5 = scmp.lt.u32.totalorder %s1604_s4, %s2232_s1 }
  0x17   : > { %p1879_p11 = pnand %p1510_p9, %p1850_p1 }
  0x19   : > { %p1606_p13 = pneg %p1879_p11 }
  0x1b   : > { %p1607_p0 = pnand %p1606_p13, %p1605_p12 }
  0x1d   : > { %p1608_p3 = pneg %p1607_p0 }
  0x1f   : > { %p1613_p7 = pnand %p1611_p5, %p1608_p3 }
  0x21   : > { %1616 = shalt.err (!%p1613_p7)
}
  0x22   : > { %s1617_s9 = scalar_lea.vmem %s157_s26, 512  ;;  %p1625_p1 = scmp.lt.s32.totalorder %s157_s26, %s157_s26 }
  0x23   : > { %p1618_p9 = scmp.ne.s32.totalorder %s157_s26, %s1617_s9  ;;  %p1626_p4 = scmp.lt.s32.totalorder %s1617_s9, %s1617_s9 }
  0x25   : > { %p1620_p10 = pnand %p1618_p9, %p1606_p13  ;;  %p1627_p8 = por %p1626_p4, %p1625_p1 }
  0x27   : > { %p1621_p6 = pneg %p1620_p10 }
  0x29   : > { %p1628_p2 = pnand %p1627_p8, %p1621_p6 }
  0x2b   : > { %1631 = shalt.err (!%p1628_p2)
}
  0x2c   : > { %s1783_s10 = smov 128   ;;  %s1784_s11 = smov 8  }
  0x2d   : > { %1513 = dma.hbm_to_vmem [thread:$0]  (!%p1879_p11), %s2232_s1, 512, %s157_s26, [#allocation6], %s1783_s10, %s1783_s10, %s1784_s11  }
  0x2e   : > { %p38_p1 = scmp.ge.s32.totalorder %s36_s28, 2  ;;  %s43_s25 = sadd.s32 1, %s1768_s14 }
  0x2f   : > { %p50_p2 = scmp.ne.s32.totalorder %s1768_s14, %s1764_s13  ;;  %p51_p4 = scmp.eq.s32.totalorder %s1780_s17, 0 }
  0x30   : > { %s2260_s28 = smov (%p38_p1, %s36_s28), 0  ;;  %p2246_p8 = scmp.ne.s32.totalorder %s2240_s21, 0 }
  0x31   : > { %p1906_p6 = por %p51_p4, %p50_p2  ;;  %s40_s27 = ssub.s32 %s1776_s16, %s2260_s28 }
  0x32   : > { %p1912_p10 = por %p2246_p8, %p50_p2  ;;  %p1526_p12 = scmp.lt.s32.totalorder %s1780_s17, 2 }
  0x33   : > { %p41_p11 = scmp.eq.s32.totalorder %s40_s27, 0  ;;  %s170_s26 = sand.u32 1, %s1768_s14  }
  0x34   : > { %s1394_s4 = sshll.u32 %s170_s26, 3  ;;  %s1395_s6 = sshll.u32 %s1776_s16, 7 }
  0x35   : > { %s1921_s5 = scalar_select %p41_p11, %s1768_s14, %s43_s25  }
  0x36   : > { %s1927_s9 = scalar_lea.hbm %s2231_s0, %s1395_s6  ;;  %s174_s21 = scalar_lea.vmem [#allocation2], %s1394_s4 }
  0x37   : > { %s181_s10 = sshll.u32 %s174_s21, 4  ;;  %p1933_p13 = pnand %p1526_p12, %p1906_p6  ;;  %s1929_s10 = int_to_ptr.vmem [resolvable:$true] %s181_s10 }
  0x38   : > { %s171_s18 = scalar_lea.sflag [#allocation3], %s170_s26  ;;  %s1632_s19 = scalar_lea.hbm %s1927_s9, 128 }
  0x39   : > { %p1633_p0 = scmp.ne.s32.totalorder %s1927_s9, %s1632_s19  ;;  %p1634_p3 = pneg %p1933_p13 }
  0x3a   : > { %s1637_s4 = scalar_lea.hbm %s2231_s0, 256  ;;  %p1638_p9 = scmp.lt.u32.totalorder %s1927_s9, %s2231_s0 }
  0x3b   : > { %p1635_p5 = pnand %p1634_p3, %p1633_p0  ;;  %p1639_p1 = scmp.lt.u32.totalorder %s1637_s4, %s1632_s19 }
  0x3c   : > { %p1641_p4 = scmp.lt.u32.totalorder %s1632_s19, %s1927_s9 }
  0x3d   : > { %p1636_p7 = pneg %p1635_p5  ;;  %p1640_p2 = por %p1639_p1, %p1638_p9 }
  0x3f   : > { %p1642_p6 = por %p1641_p4, %p1640_p2 }
  0x41   : > { %p1643_p8 = pnand %p1642_p6, %p1636_p7 }
  0x43   : > { %1646 = shalt.err (!%p1643_p8)
}
  0x44   : > { %s1647_s26 = scalar_lea.vmem %s1929_s10, 128  ;;  %s1785_s7 = smov [#allocation2]  }
  0x45   : > { %p1648_p12 = scmp.ne.s32.totalorder %s1929_s10, %s1647_s26  ;;  %s1652_s8 = sshll.u32 %s1785_s7, 4  ;;  %s1653_s8 = int_to_ptr.vmem [resolvable:$false] %s1652_s8 }
  0x46   : > { %s1654_s21 = scalar_lea.vmem %s1653_s8, 256  ;;  %p1655_p5 = scmp.lt.s32.totalorder %s1929_s10, %s1653_s8 }
  0x47   : > { %p1650_p11 = pnand %p1648_p12, %p1634_p3  ;;  %p1656_p9 = scmp.lt.s32.totalorder %s1654_s21, %s1647_s26 }
  0x49   : > { %p1651_p0 = pneg %p1650_p11  ;;  %p1657_p1 = por %p1656_p9, %p1655_p5 }
  0x4b   : > { %p1658_p2 = pnand %p1657_p1, %p1651_p0 }
  0x4d   : > { %1661 = shalt.err (!%p1658_p2)
}
  0x4e   : > { %1517 = dma.hbm_to_vmem [thread:$0]  (!%p1933_p13), %s1927_s9, 128, %s1929_s10, %s171_s18  }
  0x4f   : > { %p2249_p7 = scmp.ne.s32.totalorder %s2243_s24, 0 }
  0x50   : > { %s1965_s19 = sand.u32 (!%p2249_p7), 1, %s1764_s13   ;;  %p2250_p3 = scmp.ne.s32.totalorder (!%p2249_p7), %s2241_s22, 0 }
  0x51   : > { %190 = sbr.rel (%p2249_p7) target bundleno = 1317 (0x525), region = 28  ;;  %s1397_s25 = sshll.u32 (!%p2249_p7), %s1965_s19, 3 }
  0x52   : > { %s193_s27 = scalar_lea.sflag (!%p2249_p7), [#allocation3], %s1965_s19  ;;  %s196_s4 = scalar_lea.vmem (!%p2249_p7), [#allocation2], %s1397_s25 }
  0x58   : > { %1743 = dma.done.wait (%p2250_p3), %s193_s27, 128  }
  0x59   : > { %1745 = vsyncadd (%p2250_p3), %s193_s27, 4294967168  ;;  %p2251_p13 = scmp.ne.s32.totalorder %s2239_s20, 0 }
  0x5b   : > { %1747 = dma.done.wait (%p2251_p13), [#allocation6], 512  }
  0x5c   : > { %1749 = vsyncadd (%p2251_p13), [#allocation6], 4294966784  ;;  %v1786_v0 = vmov 0.0|0.0   ;;  %vm1787_vm0 = vmmov 0   ;;  %v1788_v1 = vmov 0.0   ;;  %v233_v2 = vld [vmem:[#allocation5] sm:$0xff]  ;;  %v404_v49 = vlaneseq }
  0x5d   : > { %1494 = vmatprep.subr.bf16.mxu0 %v1786_v0  ;;  %1451 = vmatprep.mubr.msk.f32.mxu0 %vm1787_vm0, %v1788_v1  ;;  %v234_v3 = vld [vmem:[#allocation5 + $0x8] sm:$0xff]  ;;  %v235_v4 = vld [vmem:[#allocation5 + $0x10] sm:$0xff]  ;;  %v236_v6 = vld [vmem:[#allocation5 + $0x18] sm:$0xff]  ;;  %vm237_vm1 = vcmask 261120   ;;  %s1789_s20 = smov 32   ;;  %s1790_s22 = smov 96  }
  0x5e   : > { %1454 = vmatprep.subr.mxu1 %v1788_v1  ;;  %1456 = vmatprep.mubr.msk.f32.mxu1 %vm1787_vm0, %v1788_v1  ;;  %v1495_v5 = vpack.c.bf16 %v234_v3, %v233_v2  ;;  %v1984_v7 = vld [vmem:[%s196_s4] sm:$0xff]  ;;  %v1498_v8 = vpack.c.bf16 %v236_v6, %v235_v4  ;;  %s1791_s24 = smov 64   ;;  %vm387_vm2 = vcmask 64512   ;;  %v1792_v47 = vmov 1966171168   ;;  %s1400_s9 = sshll.u32 %s1965_s19, 5 }
  0x5f   : > { %1455 = vmatpush3.xpose.msk.msra.mxu1 %vm237_vm1, %v1984_v7  ;;  %v402_v48 = vunpack.c.l.s4 %v1792_v47  ;;  %v405_v51 = vshrl.u32 %v404_v49, 7  ;;  %vm457_vm3 = vcmask 57344   ;;  %s2041_s10 = scalar_lea.vmem [#allocation8], %s1400_s9  ;;  %s1421_s11 = sshll.u32 %s1772_s15, 9 }
  0x60   : > { %1496 = vmatpush3.bf16.msra.mxu0 %v1495_v5  ;;  %1459 = vmatprep.subr.mxu1 %v1788_v1  ;;  %s1260_s18 = sshll.u32 %s2041_s10, 4  ;;  %s2143_s26 = scalar_lea.hbm %s2234_s3, %s1421_s11  ;;  %s2145_s18 = int_to_ptr.vmem [resolvable:$true] %s1260_s18 }
  0x61   : > { %1497 = vmatprep.subr.bf16.mxu0 %v1786_v0  ;;  %v403_v50 = vunpack.c.0.s8 %v402_v48  ;;  %s1231_s7 = scalar_lea.sflag [#allocation9], %s1965_s19  ;;  %s1662_s8 = scalar_lea.vmem %s2145_s18, 512 }
  0x62   : > { %p1663_p4 = scmp.ne.s32.totalorder %s2145_s18, %s1662_s8  ;;  %s1793_s21 = smov [#allocation8]  }
  0x63   : > { %v2028_v52 = vsub.s32 %v403_v50, %v405_v51  ;;  %s1666_s27 = sshll.u32 %s1793_s21, 4  ;;  %s1667_s27 = int_to_ptr.vmem [resolvable:$false] %s1666_s27 }
  0x64   : > { %1499 = vmatpush3.bf16.msra.mxu0 %v1498_v8  ;;  %p1664_p6 = pnand %p1663_p4, %p1912_p10  ;;  %s1668_s4 = scalar_lea.vmem %s1667_s27, 1024 }
  0x65   : > { %1464 = vmatprep.subr.mxu0 %v1788_v1  ;;  %p1669_p12 = scmp.lt.s32.totalorder %s2145_s18, %s1667_s27  ;;  %p1670_p11 = scmp.lt.s32.totalorder %s1668_s4, %s1662_s8 }
  0x66   : > { %p1665_p8 = pneg %p1664_p6 }
  0x67   : > { %1452 = vmatmul.mubr.msk.f32.vlgmr.msra.gmra.mrb[0].mxu0 %vm237_vm1, %v1984_v7  ;;  %p1671_p0 = por %p1670_p11, %p1669_p12 }
  0x68   : > { %1466 = vmatprep.mubr.msk.f32.mxu0 %vm1787_vm0, %v1788_v1 }
  0x69   : > { %p1672_p5 = pnand %p1671_p0, %p1665_p8 }
  0x6d   : > { %1465 = vmatpush3.xpose.msk.msra.mxu0 %vm237_vm1, %v1984_v7 }
  0x6e   : > { %1474 = vmatprep.subr.mxu0 %v1788_v1 }
 0x13a   : > { %v307_v9 = vpop.f32.mrb[0].mxu0 }
 0x13b   : > { %984 = vrot.lane.b32.xlu1 %v307_v9, %s1789_s20  ;;  %538 = vrot.lane.b32.xlu0 %v307_v9, %s1790_s22  ;;  %v1453_v10 = vpop.f32.mrb[1].mxu0 }
 0x13c   : > { %1457 = vmatmul.mubr.msk.f32.vlgmr.msra.gmra.mrb[0].mxu1 %vm237_vm1, %v307_v9 }
 0x13d   : > { %1460 = vmatpush3.msra.mxu1 %v1984_v7  ;;  %1461 = vmatprep.mubr.msk.f32.mxu1 %vm1787_vm0, %v1788_v1 }
 0x13e   : > { %1469 = vmatprep.subr.mxu1 %v1788_v1 }
 0x13f   : > { %761 = vrot.lane.b32.xlu0 %v307_v9, %s1791_s24 }
 0x1ad   : > { %v539_v11 = vpop.permute.xlu0 %538  ;;  %v985_v13 = vpop.permute.xlu1 %984 }
 0x1ae   : > { %1467 = vmatmul.mubr.msk.f32.vlgmr.msra.gmra.mrb[2].mxu0 %vm237_vm1, %v539_v11 }
 0x1af   : > { %1475 = vmatpush3.xpose.msk.msra.mxu0 %vm237_vm1, %v1984_v7  ;;  %1476 = vmatprep.mubr.msk.f32.mxu0 %vm1787_vm0, %v1788_v1 }
 0x1b0   : > { %1484 = vmatprep.subr.mxu0 %v1788_v1 }
 0x1b1   : > { %v762_v12 = vpop.permute.xlu0 %761 }
 0x1b2   : > { %1477 = vmatmul.mubr.msk.f32.vlgmr.msra.gmra.mrb[4].mxu0 %vm237_vm1, %v762_v12 }
 0x1b3   : > { %1485 = vmatpush3.xpose.msk.msra.mxu0 %vm237_vm1, %v1984_v7  ;;  %1486 = vmatprep.mubr.msk.f32.mxu0 %vm1787_vm0, %v1788_v1 }
 0x1b6   : > { %1487 = vmatmul.mubr.msk.f32.vlgmr.msra.gmra.mrb[6].mxu0 %vm237_vm1, %v985_v13 }
 0x20f   : > { %v383_v14 = vpop.f32.mrb[0].mxu1 }
 0x210   : > { %v1458_v15 = vpop.f32.mrb[1].mxu1  ;;  %v388_v16 = vsel %vm387_vm2, %v383_v14, -inf }
 0x211   : > { %389 = vmax.xlane.f32.xlu1 %v388_v16 }
 0x281   : > { %v608_v17 = vpop.f32.mrb[2].mxu0 }
 0x282   : > { %v1468_v18 = vpop.f32.mrb[3].mxu0  ;;  %v612_v19 = vsel %vm387_vm2, %v608_v17, -inf }
 0x283   : > { %613 = vmax.xlane.f32.xlu0 %v612_v19 }
 0x285   : > { %v831_v20 = vpop.f32.mrb[4].mxu0 }
 0x286   : > { %v1478_v21 = vpop.f32.mrb[5].mxu0  ;;  %v835_v22 = vsel %vm387_vm2, %v831_v20, -inf }
 0x287   : > { %836 = vmax.xlane.f32.xlu0 %v835_v22 }
 0x289   : > { %v1054_v23 = vpop.f32.mrb[6].mxu0 }
 0x28a   : > { %v1488_v24 = vpop.f32.mrb[7].mxu0  ;;  %v1058_v25 = vsel %vm387_vm2, %v1054_v23, -inf }
 0x28b   : > { %1059 = vmax.xlane.f32.xlu1 %v1058_v25 }
 0x29e   : > { %v390_v26 = vpop.xlane.xlu1 %389 }
 0x29f   : > { %v391_v27 = vsub.f32 %v383_v14, %v390_v26 }
 0x2a1   : > { %v392_v28 = vmul.f32 1.442695, %v391_v27 }
 0x2a3   : > { %1588 = vpow2.f32 %v392_v28 }
 0x2ad   : > { %v1589_v29 = vpop.eup %1588 }
 0x2ae   : > { %v394_v30 = vsel %vm387_vm2, %v1589_v29, 0.0 }
 0x2af   : > { %395 = vadd.xlane.f32.xlu0 %v394_v30 }
 0x310   : > { %v614_v31 = vpop.xlane.xlu0 %613 }
 0x311   : > { %v615_v32 = vsub.f32 %v608_v17, %v614_v31 }
 0x313   : > { %v616_v33 = vmul.f32 1.442695, %v615_v32 }
 0x314   : > { %v837_v34 = vpop.xlane.xlu0 %836 }
 0x315   : > { %1590 = vpow2.f32 %v616_v33  ;;  %v838_v35 = vsub.f32 %v831_v20, %v837_v34 }
 0x317   : > { %v839_v36 = vmul.f32 1.442695, %v838_v35 }
 0x318   : > { %v1060_v37 = vpop.xlane.xlu1 %1059 }
 0x319   : > { %1592 = vpow2.f32 %v839_v36  ;;  %v1061_v38 = vsub.f32 %v1054_v23, %v1060_v37 }
 0x31b   : > { %v1062_v39 = vmul.f32 1.442695, %v1061_v38 }
 0x31d   : > { %1594 = vpow2.f32 %v1062_v39 }
 0x31f   : > { %v1591_v40 = vpop.eup %1590 }
 0x320   : > { %v618_v41 = vsel %vm387_vm2, %v1591_v40, 0.0 }
 0x321   : > { %619 = vadd.xlane.f32.xlu1 %v618_v41 }
 0x323   : > { %v1593_v42 = vpop.eup %1592 }
 0x324   : > { %v841_v43 = vsel %vm387_vm2, %v1593_v42, 0.0 }
 0x325   : > { %842 = vadd.xlane.f32.xlu0 %v841_v43 }
 0x327   : > { %v2024_v44 = vpop.eup %1594 }
 0x328   : > { %v1064_v45 = vsel %vm387_vm2, %v2024_v44, 0.0 }
 0x329   : > { %1065 = vadd.xlane.f32.xlu1 %v1064_v45 }
 0x33c   : > { %v396_v46 = vpop.xlane.xlu0 %395 }
 0x33d   : > { %1596 = vrcp.f32 %v396_v46 }
 0x347   : > { %v1597_v53 = vpop.eup %1596 }
 0x348   : > { %v398_v54 = vmul.f32 %v1597_v53, %v1589_v29 }
 0x34a   : > { %v400_v55 = vcombine.high %v398_v54, %v398_v54  ;;  %v407_v56 = vrot.slane %v398_v54, %v2028_v52  ;;  %1462 = vmatmul.mubr.msk.f32.vlgmr.msra.gmra.mrb[2].mxu1 %vm387_vm2, %v398_v54 }
 0x34b   : > { %1470 = vmatpush3.msra.mxu1 %v1984_v7  ;;  %1471 = vmatprep.mubr.msk.f32.mxu1 %vm1787_vm0, %v1788_v1 }
 0x34c   : > { %v414_v57 = vrot.slane %v400_v55, %v2028_v52  ;;  %v415_v58 = vcombine.high %v407_v56, %v407_v56  ;;  %v423_v59 = vrot.slane %v407_v56, %v2028_v52  ;;  %1479 = vmatprep.subr.mxu1 %v1788_v1 }
 0x34e   : > { %v416_v60 = vcombine.high %v414_v57, %v414_v57  ;;  %v430_v61 = vrot.slane %v414_v57, %v2028_v52  ;;  %v437_v62 = vrot.slane %v415_v58, %v2028_v52  ;;  %v445_v63 = vcombine.high %v423_v59, %v423_v59  ;;  %458 = vst.msk [vmem:[%s2041_s10] sm:$0x1] %vm457_vm3, %v423_v59 }
 0x350   : > { %v444_v0 = vrot.slane %v416_v60, %v2028_v52  ;;  %v446_v2 = vcombine.high %v430_v61, %v430_v61  ;;  %v447_v3 = vcombine.high %v437_v62, %v437_v62  ;;  %459 = vst.msk [vmem:[%s2041_s10 + $0x4] sm:$0x1] %vm457_vm3, %v437_v62  ;;  %460 = vst.msk [vmem:[%s2041_s10 + $0x8] sm:$0x1] %vm457_vm3, %v445_v63 }
 0x351   : > { %462 = vst.msk [vmem:[%s2041_s10 + $0x10] sm:$0x1] %vm457_vm3, %v430_v61 }
 0x352   : > { %v448_v4 = vcombine.high %v444_v0, %v444_v0  ;;  %461 = vst.msk [vmem:[%s2041_s10 + $0xc] sm:$0x1] %vm457_vm3, %v447_v3  ;;  %463 = vst.msk [vmem:[%s2041_s10 + $0x14] sm:$0x1] %vm457_vm3, %v444_v0 }
 0x353   : > { %464 = vst.msk [vmem:[%s2041_s10 + $0x18] sm:$0x1] %vm457_vm3, %v446_v2 }
 0x354   : > { %465 = vst.msk [vmem:[%s2041_s10 + $0x1c] sm:$0x1] %vm457_vm3, %v448_v4 }
 0x3ae   : > { %v620_v5 = vpop.xlane.xlu1 %619 }
 0x3af   : > { %1598 = vrcp.f32 %v620_v5 }
 0x3b2   : > { %v843_v6 = vpop.xlane.xlu0 %842 }
 0x3b3   : > { %1600 = vrcp.f32 %v843_v6 }
 0x3b6   : > { %v1066_v8 = vpop.xlane.xlu1 %1065 }
 0x3b7   : > { %1602 = vrcp.f32 %v1066_v8 }
 0x3b9   : > { %v1599_v9 = vpop.eup %1598 }
 0x3ba   : > { %v622_v10 = vmul.f32 %v1599_v9, %v1591_v40 }
 0x3bc   : > { %v624_v11 = vcombine.high %v622_v10, %v622_v10  ;;  %v631_v12 = vrot.slane %v622_v10, %v2028_v52  ;;  %1472 = vmatmul.mubr.msk.f32.vlgmr.msra.gmra.mrb[4].mxu1 %vm387_vm2, %v622_v10 }
 0x3bd   : > { %v1601_v13 = vpop.eup %1600  ;;  %1480 = vmatpush3.msra.mxu1 %v1984_v7  ;;  %1481 = vmatprep.mubr.msk.f32.mxu1 %vm1787_vm0, %v1788_v1 }
 0x3be   : > { %v638_v14 = vrot.slane %v624_v11, %v2028_v52  ;;  %v639_v15 = vcombine.high %v631_v12, %v631_v12  ;;  %v647_v16 = vrot.slane %v631_v12, %v2028_v52  ;;  %v845_v17 = vmul.f32 %v1601_v13, %v1593_v42  ;;  %1489 = vmatprep.subr.mxu1 %v1788_v1 }
 0x3c0   : > { %v640_v18 = vcombine.high %v638_v14, %v638_v14  ;;  %v654_v19 = vrot.slane %v638_v14, %v2028_v52  ;;  %v661_v20 = vrot.slane %v639_v15, %v2028_v52  ;;  %v669_v21 = vcombine.high %v647_v16, %v647_v16  ;;  %681 = vst.msk [vmem:[%s2041_s10 + $0x1] sm:$0x1] %vm457_vm3, %v647_v16 }
 0x3c1   : > { %1482 = vmatmul.mubr.msk.f32.vlgmr.msra.gmra.mrb[6].mxu1 %vm387_vm2, %v845_v17  ;;  %v1603_v22 = vpop.eup %1602  ;;  %v847_v23 = vcombine.high %v845_v17, %v845_v17  ;;  %v854_v24 = vrot.slane %v845_v17, %v2028_v52 }
 0x3c2   : > { %1490 = vmatpush3.msra.mxu1 %v1984_v7  ;;  %1491 = vmatprep.mubr.msk.f32.mxu1 %vm1787_vm0, %v1788_v1  ;;  %v668_v25 = vrot.slane %v640_v18, %v2028_v52  ;;  %v670_v26 = vcombine.high %v654_v19, %v654_v19  ;;  %v671_v27 = vcombine.high %v661_v20, %v661_v20 }
 0x3c3   : > { %682 = vst.msk [vmem:[%s2041_s10 + $0x5] sm:$0x1] %vm457_vm3, %v661_v20  ;;  %683 = vst.msk [vmem:[%s2041_s10 + $0x9] sm:$0x1] %vm457_vm3, %v669_v21  ;;  %v1068_v28 = vmul.f32 %v1603_v22, %v2024_v44  ;;  %v861_v29 = vrot.slane %v847_v23, %v2028_v52  ;;  %v862_v7 = vcombine.high %v854_v24, %v854_v24 }
 0x3c4   : > { %685 = vst.msk [vmem:[%s2041_s10 + $0x11] sm:$0x1] %vm457_vm3, %v654_v19  ;;  %v870_v30 = vrot.slane %v854_v24, %v2028_v52  ;;  %v672_v1 = vcombine.high %v668_v25, %v668_v25  ;;  %684 = vst.msk [vmem:[%s2041_s10 + $0xd] sm:$0x1] %vm457_vm3, %v671_v27 }
 0x3c5   : > { %686 = vst.msk [vmem:[%s2041_s10 + $0x15] sm:$0x1] %vm457_vm3, %v668_v25  ;;  %687 = vst.msk [vmem:[%s2041_s10 + $0x19] sm:$0x1] %vm457_vm3, %v670_v26  ;;  %v1070_v31 = vcombine.high %v1068_v28, %v1068_v28  ;;  %v1077_v32 = vrot.slane %v1068_v28, %v2028_v52  ;;  %1492 = vmatmul.mubr.msk.f32.vlgmr.msra.gmra.mrb[8].mxu1 %vm387_vm2, %v1068_v28  ;;  %v863_v33 = vcombine.high %v861_v29, %v861_v29 }
 0x3c6   : > { %v877_v34 = vrot.slane %v861_v29, %v2028_v52  ;;  %v884_v35 = vrot.slane %v862_v7, %v2028_v52  ;;  %v892_v36 = vcombine.high %v870_v30, %v870_v30  ;;  %904 = vst.msk [vmem:[%s2041_s10 + $0x2] sm:$0x1] %vm457_vm3, %v870_v30  ;;  %688 = vst.msk [vmem:[%s2041_s10 + $0x1d] sm:$0x1] %vm457_vm3, %v672_v1 }
 0x3c7   : > { %v1084_v37 = vrot.slane %v1070_v31, %v2028_v52  ;;  %v1085_v38 = vcombine.high %v1077_v32, %v1077_v32  ;;  %v1093_v39 = vrot.slane %v1077_v32, %v2028_v52  ;;  %v891_v40 = vrot.slane %v863_v33, %v2028_v52 }
 0x3c8   : > { %v893_v41 = vcombine.high %v877_v34, %v877_v34  ;;  %v894_v42 = vcombine.high %v884_v35, %v884_v35  ;;  %905 = vst.msk [vmem:[%s2041_s10 + $0x6] sm:$0x1] %vm457_vm3, %v884_v35  ;;  %906 = vst.msk [vmem:[%s2041_s10 + $0xa] sm:$0x1] %vm457_vm3, %v892_v36 }
 0x3c9   : > { %908 = vst.msk [vmem:[%s2041_s10 + $0x12] sm:$0x1] %vm457_vm3, %v877_v34  ;;  %v1086_v43 = vcombine.high %v1084_v37, %v1084_v37  ;;  %v1100_v44 = vrot.slane %v1084_v37, %v2028_v52  ;;  %v1107_v45 = vrot.slane %v1085_v38, %v2028_v52  ;;  %v1115_v46 = vcombine.high %v1093_v39, %v1093_v39 }
 0x3ca   : > { %1127 = vst.msk [vmem:[%s2041_s10 + $0x3] sm:$0x1] %vm457_vm3, %v1093_v39  ;;  %v895_v47 = vcombine.high %v891_v40, %v891_v40  ;;  %907 = vst.msk [vmem:[%s2041_s10 + $0xe] sm:$0x1] %vm457_vm3, %v894_v42 }
 0x3cb   : > { %909 = vst.msk [vmem:[%s2041_s10 + $0x16] sm:$0x1] %vm457_vm3, %v891_v40  ;;  %910 = vst.msk [vmem:[%s2041_s10 + $0x1a] sm:$0x1] %vm457_vm3, %v893_v41  ;;  %v1114_v48 = vrot.slane %v1086_v43, %v2028_v52  ;;  %v1116_v49 = vcombine.high %v1100_v44, %v1100_v44  ;;  %v1117_v50 = vcombine.high %v1107_v45, %v1107_v45 }
 0x3cc   : > { %1128 = vst.msk [vmem:[%s2041_s10 + $0x7] sm:$0x1] %vm457_vm3, %v1107_v45  ;;  %1129 = vst.msk [vmem:[%s2041_s10 + $0xb] sm:$0x1] %vm457_vm3, %v1115_v46 }
 0x3cd   : > { %1131 = vst.msk [vmem:[%s2041_s10 + $0x13] sm:$0x1] %vm457_vm3, %v1100_v44  ;;  %911 = vst.msk [vmem:[%s2041_s10 + $0x1e] sm:$0x1] %vm457_vm3, %v895_v47  ;;  %v1118_v51 = vcombine.high %v1114_v48, %v1114_v48 }
 0x3ce   : > { %1130 = vst.msk [vmem:[%s2041_s10 + $0xf] sm:$0x1] %vm457_vm3, %v1117_v50  ;;  %1132 = vst.msk [vmem:[%s2041_s10 + $0x17] sm:$0x1] %vm457_vm3, %v1114_v48 }
 0x3cf   : > { %1133 = vst.msk [vmem:[%s2041_s10 + $0x1b] sm:$0x1] %vm457_vm3, %v1116_v49  ;;  %1134 = vst.msk [vmem:[%s2041_s10 + $0x1f] sm:$0x1] %vm457_vm3, %v1118_v51 }
 0x41d   : > { %v534_v52 = vpop.f32.mrb[2].mxu1 }
 0x41e   : > { %v1463_v53 = vpop.f32.mrb[3].mxu1 }
 0x48f   : > { %v757_v54 = vpop.f32.mrb[4].mxu1 }
 0x490   : > { %1208 = vrot.lane.b32.xlu0 %v757_v54, %s1789_s20  ;;  %v1473_v55 = vpop.f32.mrb[5].mxu1 }
 0x491   : > { %1675 = shalt.err (!%p1672_p5)
}
 0x492   : > { %s1676_s20 = scalar_lea.hbm %s2143_s26, 512  ;;  %s1680_s11 = scalar_lea.hbm %s2234_s3, 1024 }
 0x493   : > { %p1677_p9 = scmp.ne.s32.totalorder %s2143_s26, %s1676_s20  ;;  %p1681_p7 = scmp.lt.u32.totalorder %s2143_s26, %s2234_s3 }
 0x494   : > { %p1682_p3 = scmp.lt.u32.totalorder %s1680_s11, %s1676_s20  ;;  %p1684_p4 = scmp.lt.u32.totalorder %s1676_s20, %s2143_s26 }
 0x495   : > { %p1678_p1 = pnand %p1677_p9, %p1912_p10 }
 0x496   : > { %p1683_p13 = por %p1682_p3, %p1681_p7 }
 0x497   : > { %p1679_p2 = pneg %p1678_p1 }
 0x498   : > { %p1685_p6 = por %p1684_p4, %p1683_p13 }
 0x49a   : > { %p1686_p8 = pnand %p1685_p6, %p1679_p2 }
 0x49c   : > { %1689 = shalt.err (!%p1686_p8)
}
 0x49d   : > { %s1794_s8 = smov 4   ;;  %v980_v56 = vpop.f32.mrb[6].mxu1  ;;  %vm1220_vm4 = vcmask 523264   ;;  %s1416_s21 = sshll.u32 %s1772_s15, 7  ;;  %vm1222_vm5 = vcmask 785408  }
 0x49e   : > { %1507 = dma.vmem_to_hbm [thread:$0]  (%p1912_p10), %s2145_s18, 512, %s2143_s26, %s1231_s7, %s1791_s24, %s1791_s24, %s1794_s8   ;;  %v1483_v57 = vpop.f32.mrb[7].mxu1 }
 0x49f   : > { %1212 = vrot.lane.b32.xlu1 %v980_v56, %s1791_s24  ;;  %v1203_v58 = vpop.f32.mrb[8].mxu1  ;;  %s220_s27 = scalar_lea.vmem [#allocation7], %s1397_s25  ;;  %s2182_s26 = scalar_lea.hbm %s2233_s2, %s1416_s21 }
 0x4a0   : > { %v1493_v59 = vpop.f32.mrb[9].mxu1  ;;  %s1245_s4 = sshll.u32 %s220_s27, 4  ;;  %s1226_s15 = scalar_lea.sflag [#allocation4], %s1965_s19  ;;  %s2184_s4 = int_to_ptr.vmem [resolvable:$true] %s1245_s4 }
 0x4a1   : > { %s1690_s25 = scalar_lea.vmem %s2184_s4, 128 }
 0x4a2   : > { %p1691_p12 = scmp.ne.s32.totalorder %s2184_s4, %s1690_s25 }
 0x4a3   : > { %1216 = vrot.lane.b32.xlu1 %v1203_v58, %s1790_s22  ;;  %s1795_s22 = smov [#allocation7]  }
 0x4a4   : > { %p1692_p11 = pnand %p1691_p12, %p1912_p10  ;;  %s1694_s7 = sshll.u32 %s1795_s22, 4  ;;  %s1695_s7 = int_to_ptr.vmem [resolvable:$false] %s1694_s7 }
 0x4a5   : > { %s1696_s20 = scalar_lea.vmem %s1695_s7, 256  ;;  %p1697_p5 = scmp.lt.s32.totalorder %s2184_s4, %s1695_s7 }
 0x4a6   : > { %p1693_p0 = pneg %p1692_p11  ;;  %p1698_p9 = scmp.lt.s32.totalorder %s1696_s20, %s1690_s25 }
 0x4a8   : > { %p1699_p1 = por %p1698_p9, %p1697_p5 }
 0x4aa   : > { %p1700_p2 = pnand %p1699_p1, %p1693_p0 }
 0x502   : > { %v1209_v60 = vpop.permute.xlu0 %1208 }
 0x503   : > { %v1219_v62 = vsel %vm237_vm1, %v534_v52, %v1209_v60 }
 0x511   : > { %v1213_v61 = vpop.permute.xlu1 %1212 }
 0x512   : > { %v1221_v63 = vsel %vm1220_vm4, %v1219_v62, %v1213_v61 }
 0x515   : > { %v1217_v0 = vpop.permute.xlu1 %1216 }
 0x516   : > { %v1223_v2 = vsel %vm1222_vm5, %v1221_v63, %v1217_v0 }
 0x517   : > { %1224 = vst [vmem:[%s220_s27] sm:$0xff] %v1223_v2 }
 0x518   : > { %1703 = shalt.err (!%p1700_p2)
}
 0x519   : > { %s1704_s19 = scalar_lea.hbm %s2182_s26, 128  ;;  %s1708_s11 = scalar_lea.hbm %s2233_s2, 256 }
 0x51a   : > { %p1705_p7 = scmp.ne.s32.totalorder %s2182_s26, %s1704_s19  ;;  %p1709_p4 = scmp.lt.u32.totalorder %s2182_s26, %s2233_s2 }
 0x51b   : > { %p1710_p6 = scmp.lt.u32.totalorder %s1708_s11, %s1704_s19  ;;  %p1712_p12 = scmp.lt.u32.totalorder %s1704_s19, %s2182_s26 }
 0x51c   : > { %p1706_p3 = pnand %p1705_p7, %p1912_p10 }
 0x51d   : > { %p1711_p8 = por %p1710_p6, %p1709_p4 }
 0x51e   : > { %p1707_p13 = pneg %p1706_p3 }
 0x51f   : > { %p1713_p11 = por %p1712_p12, %p1711_p8 }
 0x521   : > { %p1714_p0 = pnand %p1713_p11, %p1707_p13 }
 0x523   : > { %1717 = shalt.err (!%p1714_p0)
}
 0x524   : > { %1506 = dma.vmem_to_hbm [thread:$0]  (%p1912_p10), %s2184_s4, 128, %s2182_s26, %s1226_s15  }
 0x525 PF: > { %s1275_s8 = sand.u32 1, %s1760_s12   ;;  %p2252_p5 = scmp.ne.s32.totalorder %s2242_s23, 0 }
 0x526   : > { %p2253_p9 = scmp.ge.s32.totalorder %s1780_s17, 2  ;;  %s1276_s21 = scalar_lea.sflag [#allocation4], %s1275_s8 }
 0x528   : > { %p1519_p1 = pnand %p2253_p9, %p2252_p5 }
 0x52a   : > { %1751 = dma.done.wait (!%p1519_p1), %s1276_s21, 128  }
 0x52b   : > { %1753 = vsyncadd (!%p1519_p1), %s1276_s21, 4294967168  ;;  %s1285_s27 = scalar_lea.sflag [#allocation9], %s1275_s8 }
 0x52c   : > { %1755 = dma.done.wait (!%p1519_p1), %s1285_s27, 512  }
 0x52d   : > { %1757 = vsyncadd (!%p1519_p1), %s1285_s27, 4294966784  ;;  %s24_s17 = sadd.s32 1, %s1780_s17   ;;  %s2254_s12 = smov %s1764_s13 }
 0x52e   : > { %p21_p2 = scmp.ge.s32.totalorder %s24_s17, 4   ;;  %s2255_s13 = smov %s1768_s14 }
 0x52f   : > { %s2256_s14 = smov %s1921_s5  ;;  %s2257_s15 = smov %s1776_s16 }
 0x530   : > { %s2258_s16 = smov %s2260_s28  ;;  %23 = sbr.rel (!%p21_p2) target bundleno = 9 (0x9), region = 95 }
 0x537   :  { %1290 = vsyncpa [#allocation3], 1 }
 0x538   :  { %1292 = vsyncpa [#allocation3 + $0x1], 1 }
 0x539   :  { %1293 = vsyncpa [#allocation6], 1 }
 0x53a   :  { %1294 = vsyncpa [#allocation4], 1 }
 0x53b   :  { %1296 = vsyncpa [#allocation4 + $0x1], 1 }
 0x53c   :  { %1297 = vsyncpa [#allocation9], 1 }
 0x53d   :  { %1299 = vsyncpa [#allocation9 + $0x1], 1 }

// kernel: tpu_custom_call.1
= control target key start
LH: loop header
LB: loop body
LE: loop exit
PB: predicated region body
PF: predicated region fallthrough
CT: control target
= control target key end

     0   :  { %9 = vsyncpa [#allocation3], 0  ;;  %s2231_s0 = inlined_call_operand.hbm [shape: f32[2,8,32], index: 0, kind: input, shape index: {}]   ;;  %s2232_s1 = inlined_call_operand.hbm [shape: f32[32,128], index: 1, kind: input, shape index: {}]   ;;  %s2233_s2 = inlined_call_operand.hbm [shape: f32[2,8,128], index: 2, kind: output, shape index: {0}]   ;;  %s2234_s3 = inlined_call_operand.hbm [shape: f32[2,8,4,8], index: 3, kind: output, shape index: {1}]  }
   0x1   :  { %11 = vsyncpa [#allocation3 + $0x1], 0 }
   0x2   :  { %12 = vsyncpa [#allocation6], 0 }
   0x3   :  { %13 = vsyncpa [#allocation4], 0 }
   0x4   :  { %15 = vsyncpa [#allocation4 + $0x1], 0 }
   0x5   :  { %16 = vsyncpa [#allocation9], 0 }
   0x6   :  { %18 = vsyncpa [#allocation9 + $0x1], 0  ;;  %s1816_s12 = smov 0   ;;  %s1818_s13 = smov 0  }
   0x7   :  { %s1820_s14 = smov 0   ;;  %s1822_s15 = smov 0  }
   0x8   :  { %s1824_s16 = smov 0   ;;  %s1826_s17 = smov 0  }
   0x9 LB: > { %s1389_s18 = sadd.s32 4294967295, %s1780_s17   ;;  %s1390_s19 = sadd.s32 4294967294, %s1780_s17   ;;  %s1780_s17 = sphi %s1826_s17, %s24_s17   ;;  %s1776_s16 = sphi %s1824_s16, %s2258_s16   ;;  %s1772_s15 = sphi %s1822_s15, %s2257_s15   ;;  %s1768_s14 = sphi %s1820_s14, %s2256_s14   ;;  %s1764_s13 = sphi %s1818_s13, %s2255_s13   ;;  %s1760_s12 = sphi %s1816_s12, %s2254_s12  }
   0xa   : > { %p56_p0 = scmp.ne.s32.totalorder %s1764_s13, %s1760_s12  ;;  %p1850_p1 = scmp.eq.s32.totalorder %s1389_s18, 0 }
   0xb   : > { %p1854_p2 = scmp.eq.s32.totalorder %s1389_s18, 1  ;;  %p109_p3 = scmp.eq.s32.totalorder %s1390_s19, 1 }
   0xc   : > { %s2239_s20 = scalar_select %p1850_p1, 1, 0 }
   0xd   : > { %s2240_s21 = scalar_select %p1854_p2, 1, 0 }
   0xe   : > { %p1860_p4 = por %p1850_p1, %p56_p0  ;;  %p1391_p5 = scmp.ge.s32.totalorder %s1780_s17, 1 }
   0xf   : > { %p1865_p6 = por %p109_p3, %p56_p0  ;;  %p144_p7 = scmp.lt.s32.totalorder %s1780_s17, 3 }
  0x10   : > { %s2241_s22 = scalar_select %p1860_p4, 1, 0 }
  0x11   : > { %s2242_s23 = scalar_select %p1865_p6, 1, 0 }
  0x12   : > { %p1870_p8 = pnand %p1391_p5, %p144_p7  ;;  %s1782_s25 = smov [#allocation5]  }
  0x13   : > { %s156_s26 = sshll.u32 %s1782_s25, 4  ;;  %s36_s28 = sadd.s32 1, %s1776_s16  ;;  %s157_s26 = int_to_ptr.vmem [resolvable:$true] %s156_s26 }
  0x14   : > { %s2243_s24 = scalar_select %p1870_p8, 1, 0 }
  0x15   : > { %p1510_p9 = pneg %p1870_p8  ;;  %s1604_s4 = scalar_lea.hbm %s2232_s1, 512 }
  0x16   : > { %p1605_p12 = scmp.ne.s32.totalorder %s2232_s1, %s1604_s4  ;;  %p1611_p5 = scmp.lt.u32.totalorder %s1604_s4, %s2232_s1 }
  0x17   : > { %p1879_p11 = pnand %p1510_p9, %p1850_p1 }
  0x19   : > { %p1606_p13 = pneg %p1879_p11 }
  0x1b   : > { %p1607_p0 = pnand %p1606_p13, %p1605_p12 }
  0x1d   : > { %p1608_p3 = pneg %p1607_p0 }
  0x1f   : > { %p1613_p7 = pnand %p1611_p5, %p1608_p3 }
  0x21   : > { %1616 = shalt.err (!%p1613_p7)
}
  0x22   : > { %s1617_s9 = scalar_lea.vmem %s157_s26, 512  ;;  %p1625_p1 = scmp.lt.s32.totalorder %s157_s26, %s157_s26 }
  0x23   : > { %p1618_p9 = scmp.ne.s32.totalorder %s157_s26, %s1617_s9  ;;  %p1626_p4 = scmp.lt.s32.totalorder %s1617_s9, %s1617_s9 }
  0x25   : > { %p1620_p10 = pnand %p1618_p9, %p1606_p13  ;;  %p1627_p8 = por %p1626_p4, %p1625_p1 }
  0x27   : > { %p1621_p6 = pneg %p1620_p10 }
  0x29   : > { %p1628_p2 = pnand %p1627_p8, %p1621_p6 }
  0x2b   : > { %1631 = shalt.err (!%p1628_p2)
}
  0x2c   : > { %s1783_s10 = smov 128   ;;  %s1784_s11 = smov 8  }
  0x2d   : > { %1513 = dma.hbm_to_vmem [thread:$0]  (!%p1879_p11), %s2232_s1, 512, %s157_s26, [#allocation6], %s1783_s10, %s1783_s10, %s1784_s11  }
  0x2e   : > { %p38_p1 = scmp.ge.s32.totalorder %s36_s28, 2  ;;  %s43_s25 = sadd.s32 1, %s1768_s14 }
  0x2f   : > { %p50_p2 = scmp.ne.s32.totalorder %s1768_s14, %s1764_s13  ;;  %p51_p4 = scmp.eq.s32.totalorder %s1780_s17, 0 }
  0x30   : > { %s2260_s28 = smov (%p38_p1, %s36_s28), 0  ;;  %p2246_p8 = scmp.ne.s32.totalorder %s2240_s21, 0 }
  0x31   : > { %p1906_p6 = por %p51_p4, %p50_p2  ;;  %s40_s27 = ssub.s32 %s1776_s16, %s2260_s28 }
  0x32   : > { %p1912_p10 = por %p2246_p8, %p50_p2  ;;  %p1526_p12 = scmp.lt.s32.totalorder %s1780_s17, 2 }
  0x33   : > { %p41_p11 = scmp.eq.s32.totalorder %s40_s27, 0  ;;  %s170_s26 = sand.u32 1, %s1768_s14  }
  0x34   : > { %s1394_s4 = sshll.u32 %s170_s26, 3  ;;  %s1395_s6 = sshll.u32 %s1776_s16, 7 }
  0x35   : > { %s1921_s5 = scalar_select %p41_p11, %s1768_s14, %s43_s25  }
  0x36   : > { %s1927_s9 = scalar_lea.hbm %s2231_s0, %s1395_s6  ;;  %s174_s21 = scalar_lea.vmem [#allocation2], %s1394_s4 }
  0x37   : > { %s181_s10 = sshll.u32 %s174_s21, 4  ;;  %p1933_p13 = pnand %p1526_p12, %p1906_p6  ;;  %s1929_s10 = int_to_ptr.vmem [resolvable:$true] %s181_s10 }
  0x38   : > { %s171_s18 = scalar_lea.sflag [#allocation3], %s170_s26  ;;  %s1632_s19 = scalar_lea.hbm %s1927_s9, 128 }
  0x39   : > { %p1633_p0 = scmp.ne.s32.totalorder %s1927_s9, %s1632_s19  ;;  %p1634_p3 = pneg %p1933_p13 }
  0x3a   : > { %s1637_s4 = scalar_lea.hbm %s2231_s0, 256  ;;  %p1638_p9 = scmp.lt.u32.totalorder %s1927_s9, %s2231_s0 }
  0x3b   : > { %p1635_p5 = pnand %p1634_p3, %p1633_p0  ;;  %p1639_p1 = scmp.lt.u32.totalorder %s1637_s4, %s1632_s19 }
  0x3c   : > { %p1641_p4 = scmp.lt.u32.totalorder %s1632_s19, %s1927_s9 }
  0x3d   : > { %p1636_p7 = pneg %p1635_p5  ;;  %p1640_p2 = por %p1639_p1, %p1638_p9 }
  0x3f   : > { %p1642_p6 = por %p1641_p4, %p1640_p2 }
  0x41   : > { %p1643_p8 = pnand %p1642_p6, %p1636_p7 }
  0x43   : > { %1646 = shalt.err (!%p1643_p8)
}
  0x44   : > { %s1647_s26 = scalar_lea.vmem %s1929_s10, 128  ;;  %s1785_s7 = smov [#allocation2]  }
  0x45   : > { %p1648_p12 = scmp.ne.s32.totalorder %s1929_s10, %s1647_s26  ;;  %s1652_s8 = sshll.u32 %s1785_s7, 4  ;;  %s1653_s8 = int_to_ptr.vmem [resolvable:$false] %s1652_s8 }
  0x46   : > { %s1654_s21 = scalar_lea.vmem %s1653_s8, 256  ;;  %p1655_p5 = scmp.lt.s32.totalorder %s1929_s10, %s1653_s8 }
  0x47   : > { %p1650_p11 = pnand %p1648_p12, %p1634_p3  ;;  %p1656_p9 = scmp.lt.s32.totalorder %s1654_s21, %s1647_s26 }
  0x49   : > { %p1651_p0 = pneg %p1650_p11  ;;  %p1657_p1 = por %p1656_p9, %p1655_p5 }
  0x4b   : > { %p1658_p2 = pnand %p1657_p1, %p1651_p0 }
  0x4d   : > { %1661 = shalt.err (!%p1658_p2)
}
  0x4e   : > { %1517 = dma.hbm_to_vmem [thread:$0]  (!%p1933_p13), %s1927_s9, 128, %s1929_s10, %s171_s18  }
  0x4f   : > { %p2249_p7 = scmp.ne.s32.totalorder %s2243_s24, 0 }
  0x50   : > { %s1965_s19 = sand.u32 (!%p2249_p7), 1, %s1764_s13   ;;  %p2250_p3 = scmp.ne.s32.totalorder (!%p2249_p7), %s2241_s22, 0 }
  0x51   : > { %190 = sbr.rel (%p2249_p7) target bundleno = 1317 (0x525), region = 28  ;;  %s1397_s25 = sshll.u32 (!%p2249_p7), %s1965_s19, 3 }
  0x52   : > { %s193_s27 = scalar_lea.sflag (!%p2249_p7), [#allocation3], %s1965_s19  ;;  %s196_s4 = scalar_lea.vmem (!%p2249_p7), [#allocation2], %s1397_s25 }
  0x58   : > { %1743 = dma.done.wait (%p2250_p3), %s193_s27, 128  }
  0x59   : > { %1745 = vsyncadd (%p2250_p3), %s193_s27, 4294967168  ;;  %p2251_p13 = scmp.ne.s32.totalorder %s2239_s20, 0 }
  0x5b   : > { %1747 = dma.done.wait (%p2251_p13), [#allocation6], 512  }
  0x5c   : > { %1749 = vsyncadd (%p2251_p13), [#allocation6], 4294966784  ;;  %v1786_v0 = vmov 0.0|0.0   ;;  %vm1787_vm0 = vmmov 0   ;;  %v1788_v1 = vmov 0.0   ;;  %v233_v2 = vld [vmem:[#allocation5] sm:$0xff]  ;;  %v404_v49 = vlaneseq }
  0x5d   : > { %1494 = vmatprep.subr.bf16.mxu0 %v1786_v0  ;;  %1451 = vmatprep.mubr.msk.f32.mxu0 %vm1787_vm0, %v1788_v1  ;;  %v234_v3 = vld [vmem:[#allocation5 + $0x8] sm:$0xff]  ;;  %v235_v4 = vld [vmem:[#allocation5 + $0x10] sm:$0xff]  ;;  %v236_v6 = vld [vmem:[#allocation5 + $0x18] sm:$0xff]  ;;  %vm237_vm1 = vcmask 261120   ;;  %s1789_s20 = smov 32   ;;  %s1790_s22 = smov 96  }
  0x5e   : > { %1454 = vmatprep.subr.mxu1 %v1788_v1  ;;  %1456 = vmatprep.mubr.msk.f32.mxu1 %vm1787_vm0, %v1788_v1  ;;  %v1495_v5 = vpack.c.bf16 %v234_v3, %v233_v2  ;;  %v1984_v7 = vld [vmem:[%s196_s4] sm:$0xff]  ;;  %v1498_v8 = vpack.c.bf16 %v236_v6, %v235_v4  ;;  %s1791_s24 = smov 64   ;;  %vm387_vm2 = vcmask 64512   ;;  %v1792_v47 = vmov 1966171168   ;;  %s1400_s9 = sshll.u32 %s1965_s19, 5 }
  0x5f   : > { %1455 = vmatpush3.xpose.msk.msra.mxu1 %vm237_vm1, %v1984_v7  ;;  %v402_v48 = vunpack.c.l.s4 %v1792_v47  ;;  %v405_v51 = vshrl.u32 %v404_v49, 7  ;;  %vm457_vm3 = vcmask 57344   ;;  %s2041_s10 = scalar_lea.vmem [#allocation8], %s1400_s9  ;;  %s1421_s11 = sshll.u32 %s1772_s15, 9 }
  0x60   : > { %1496 = vmatpush3.bf16.msra.mxu0 %v1495_v5  ;;  %1459 = vmatprep.subr.mxu1 %v1788_v1  ;;  %s1260_s18 = sshll.u32 %s2041_s10, 4  ;;  %s2143_s26 = scalar_lea.hbm %s2234_s3, %s1421_s11  ;;  %s2145_s18 = int_to_ptr.vmem [resolvable:$true] %s1260_s18 }
  0x61   : > { %1497 = vmatprep.subr.bf16.mxu0 %v1786_v0  ;;  %v403_v50 = vunpack.c.0.s8 %v402_v48  ;;  %s1231_s7 = scalar_lea.sflag [#allocation9], %s1965_s19  ;;  %s1662_s8 = scalar_lea.vmem %s2145_s18, 512 }
  0x62   : > { %p1663_p4 = scmp.ne.s32.totalorder %s2145_s18, %s1662_s8  ;;  %s1793_s21 = smov [#allocation8]  }
  0x63   : > { %v2028_v52 = vsub.s32 %v403_v50, %v405_v51  ;;  %s1666_s27 = sshll.u32 %s1793_s21, 4  ;;  %s1667_s27 = int_to_ptr.vmem [resolvable:$false] %s1666_s27 }
  0x64   : > { %1499 = vmatpush3.bf16.msra.mxu0 %v1498_v8  ;;  %p1664_p6 = pnand %p1663_p4, %p1912_p10  ;;  %s1668_s4 = scalar_lea.vmem %s1667_s27, 1024 }
  0x65   : > { %1464 = vmatprep.subr.mxu0 %v1788_v1  ;;  %p1669_p12 = scmp.lt.s32.totalorder %s2145_s18, %s1667_s27  ;;  %p1670_p11 = scmp.lt.s32.totalorder %s1668_s4, %s1662_s8 }
  0x66   : > { %p1665_p8 = pneg %p1664_p6 }
  0x67   : > { %1452 = vmatmul.mubr.msk.f32.vlgmr.msra.gmra.mrb[0].mxu0 %vm237_vm1, %v1984_v7  ;;  %p1671_p0 = por %p1670_p11, %p1669_p12 }
  0x68   : > { %1466 = vmatprep.mubr.msk.f32.mxu0 %vm1787_vm0, %v1788_v1 }
  0x69   : > { %p1672_p5 = pnand %p1671_p0, %p1665_p8 }
  0x6d   : > { %1465 = vmatpush3.xpose.msk.msra.mxu0 %vm237_vm1, %v1984_v7 }
  0x6e   : > { %1474 = vmatprep.subr.mxu0 %v1788_v1 }
 0x13a   : > { %v307_v9 = vpop.f32.mrb[0].mxu0 }
 0x13b   : > { %984 = vrot.lane.b32.xlu1 %v307_v9, %s1789_s20  ;;  %538 = vrot.lane.b32.xlu0 %v307_v9, %s1790_s22  ;;  %v1453_v10 = vpop.f32.mrb[1].mxu0 }
 0x13c   : > { %1457 = vmatmul.mubr.msk.f32.vlgmr.msra.gmra.mrb[0].mxu1 %vm237_vm1, %v307_v9 }
 0x13d   : > { %1460 = vmatpush3.msra.mxu1 %v1984_v7  ;;  %1461 = vmatprep.mubr.msk.f32.mxu1 %vm1787_vm0, %v1788_v1 }
 0x13e   : > { %1469 = vmatprep.subr.mxu1 %v1788_v1 }
 0x13f   : > { %761 = vrot.lane.b32.xlu0 %v307_v9, %s1791_s24 }
 0x1ad   : > { %v539_v11 = vpop.permute.xlu0 %538  ;;  %v985_v13 = vpop.permute.xlu1 %984 }
 0x1ae   : > { %1467 = vmatmul.mubr.msk.f32.vlgmr.msra.gmra.mrb[2].mxu0 %vm237_vm1, %v539_v11 }
 0x1af   : > { %1475 = vmatpush3.xpose.msk.msra.mxu0 %vm237_vm1, %v1984_v7  ;;  %1476 = vmatprep.mubr.msk.f32.mxu0 %vm1787_vm0, %v1788_v1 }
 0x1b0   : > { %1484 = vmatprep.subr.mxu0 %v1788_v1 }
 0x1b1   : > { %v762_v12 = vpop.permute.xlu0 %761 }
 0x1b2   : > { %1477 = vmatmul.mubr.msk.f32.vlgmr.msra.gmra.mrb[4].mxu0 %vm237_vm1, %v762_v12 }
 0x1b3   : > { %1485 = vmatpush3.xpose.msk.msra.mxu0 %vm237_vm1, %v1984_v7  ;;  %1486 = vmatprep.mubr.msk.f32.mxu0 %vm1787_vm0, %v1788_v1 }
 0x1b6   : > { %1487 = vmatmul.mubr.msk.f32.vlgmr.msra.gmra.mrb[6].mxu0 %vm237_vm1, %v985_v13 }
 0x20f   : > { %v383_v14 = vpop.f32.mrb[0].mxu1 }
 0x210   : > { %v1458_v15 = vpop.f32.mrb[1].mxu1  ;;  %v388_v16 = vsel %vm387_vm2, %v383_v14, -inf }
 0x211   : > { %389 = vmax.xlane.f32.xlu1 %v388_v16 }
 0x281   : > { %v608_v17 = vpop.f32.mrb[2].mxu0 }
 0x282   : > { %v1468_v18 = vpop.f32.mrb[3].mxu0  ;;  %v612_v19 = vsel %vm387_vm2, %v608_v17, -inf }
 0x283   : > { %613 = vmax.xlane.f32.xlu0 %v612_v19 }
 0x285   : > { %v831_v20 = vpop.f32.mrb[4].mxu0 }
 0x286   : > { %v1478_v21 = vpop.f32.mrb[5].mxu0  ;;  %v835_v22 = vsel %vm387_vm2, %v831_v20, -inf }
 0x287   : > { %836 = vmax.xlane.f32.xlu0 %v835_v22 }
 0x289   : > { %v1054_v23 = vpop.f32.mrb[6].mxu0 }
 0x28a   : > { %v1488_v24 = vpop.f32.mrb[7].mxu0  ;;  %v1058_v25 = vsel %vm387_vm2, %v1054_v23, -inf }
 0x28b   : > { %1059 = vmax.xlane.f32.xlu1 %v1058_v25 }
 0x29e   : > { %v390_v26 = vpop.xlane.xlu1 %389 }
 0x29f   : > { %v391_v27 = vsub.f32 %v383_v14, %v390_v26 }
 0x2a1   : > { %v392_v28 = vmul.f32 1.442695, %v391_v27 }
 0x2a3   : > { %1588 = vpow2.f32 %v392_v28 }
 0x2ad   : > { %v1589_v29 = vpop.eup %1588 }
 0x2ae   : > { %v394_v30 = vsel %vm387_vm2, %v1589_v29, 0.0 }
 0x2af   : > { %395 = vadd.xlane.f32.xlu0 %v394_v30 }
 0x310   : > { %v614_v31 = vpop.xlane.xlu0 %613 }
 0x311   : > { %v615_v32 = vsub.f32 %v608_v17, %v614_v31 }
 0x313   : > { %v616_v33 = vmul.f32 1.442695, %v615_v32 }
 0x314   : > { %v837_v34 = vpop.xlane.xlu0 %836 }
 0x315   : > { %1590 = vpow2.f32 %v616_v33  ;;  %v838_v35 = vsub.f32 %v831_v20, %v837_v34 }
 0x317   : > { %v839_v36 = vmul.f32 1.442695, %v838_v35 }
 0x318   : > { %v1060_v37 = vpop.xlane.xlu1 %1059 }
 0x319   : > { %1592 = vpow2.f32 %v839_v36  ;;  %v1061_v38 = vsub.f32 %v1054_v23, %v1060_v37 }
 0x31b   : > { %v1062_v39 = vmul.f32 1.442695, %v1061_v38 }
 0x31d   : > { %1594 = vpow2.f32 %v1062_v39 }
 0x31f   : > { %v1591_v40 = vpop.eup %1590 }
 0x320   : > { %v618_v41 = vsel %vm387_vm2, %v1591_v40, 0.0 }
 0x321   : > { %619 = vadd.xlane.f32.xlu1 %v618_v41 }
 0x323   : > { %v1593_v42 = vpop.eup %1592 }
 0x324   : > { %v841_v43 = vsel %vm387_vm2, %v1593_v42, 0.0 }
 0x325   : > { %842 = vadd.xlane.f32.xlu0 %v841_v43 }
 0x327   : > { %v2024_v44 = vpop.eup %1594 }
 0x328   : > { %v1064_v45 = vsel %vm387_vm2, %v2024_v44, 0.0 }
 0x329   : > { %1065 = vadd.xlane.f32.xlu1 %v1064_v45 }
 0x33c   : > { %v396_v46 = vpop.xlane.xlu0 %395 }
 0x33d   : > { %1596 = vrcp.f32 %v396_v46 }
 0x347   : > { %v1597_v53 = vpop.eup %1596 }
 0x348   : > { %v398_v54 = vmul.f32 %v1597_v53, %v1589_v29 }
 0x34a   : > { %v400_v55 = vcombine.high %v398_v54, %v398_v54  ;;  %v407_v56 = vrot.slane %v398_v54, %v2028_v52  ;;  %1462 = vmatmul.mubr.msk.f32.vlgmr.msra.gmra.mrb[2].mxu1 %vm387_vm2, %v398_v54 }
 0x34b   : > { %1470 = vmatpush3.msra.mxu1 %v1984_v7  ;;  %1471 = vmatprep.mubr.msk.f32.mxu1 %vm1787_vm0, %v1788_v1 }
 0x34c   : > { %v414_v57 = vrot.slane %v400_v55, %v2028_v52  ;;  %v415_v58 = vcombine.high %v407_v56, %v407_v56  ;;  %v423_v59 = vrot.slane %v407_v56, %v2028_v52  ;;  %1479 = vmatprep.subr.mxu1 %v1788_v1 }
 0x34e   : > { %v416_v60 = vcombine.high %v414_v57, %v414_v57  ;;  %v430_v61 = vrot.slane %v414_v57, %v2028_v52  ;;  %v437_v62 = vrot.slane %v415_v58, %v2028_v52  ;;  %v445_v63 = vcombine.high %v423_v59, %v423_v59  ;;  %458 = vst.msk [vmem:[%s2041_s10] sm:$0x1] %vm457_vm3, %v423_v59 }
 0x350   : > { %v444_v0 = vrot.slane %v416_v60, %v2028_v52  ;;  %v446_v2 = vcombine.high %v430_v61, %v430_v61  ;;  %v447_v3 = vcombine.high %v437_v62, %v437_v62  ;;  %459 = vst.msk [vmem:[%s2041_s10 + $0x4] sm:$0x1] %vm457_vm3, %v437_v62  ;;  %460 = vst.msk [vmem:[%s2041_s10 + $0x8] sm:$0x1] %vm457_vm3, %v445_v63 }
 0x351   : > { %462 = vst.msk [vmem:[%s2041_s10 + $0x10] sm:$0x1] %vm457_vm3, %v430_v61 }
 0x352   : > { %v448_v4 = vcombine.high %v444_v0, %v444_v0  ;;  %461 = vst.msk [vmem:[%s2041_s10 + $0xc] sm:$0x1] %vm457_vm3, %v447_v3  ;;  %463 = vst.msk [vmem:[%s2041_s10 + $0x14] sm:$0x1] %vm457_vm3, %v444_v0 }
 0x353   : > { %464 = vst.msk [vmem:[%s2041_s10 + $0x18] sm:$0x1] %vm457_vm3, %v446_v2 }
 0x354   : > { %465 = vst.msk [vmem:[%s2041_s10 + $0x1c] sm:$0x1] %vm457_vm3, %v448_v4 }
 0x3ae   : > { %v620_v5 = vpop.xlane.xlu1 %619 }
 0x3af   : > { %1598 = vrcp.f32 %v620_v5 }
 0x3b2   : > { %v843_v6 = vpop.xlane.xlu0 %842 }
 0x3b3   : > { %1600 = vrcp.f32 %v843_v6 }
 0x3b6   : > { %v1066_v8 = vpop.xlane.xlu1 %1065 }
 0x3b7   : > { %1602 = vrcp.f32 %v1066_v8 }
 0x3b9   : > { %v1599_v9 = vpop.eup %1598 }
 0x3ba   : > { %v622_v10 = vmul.f32 %v1599_v9, %v1591_v40 }
 0x3bc   : > { %v624_v11 = vcombine.high %v622_v10, %v622_v10  ;;  %v631_v12 = vrot.slane %v622_v10, %v2028_v52  ;;  %1472 = vmatmul.mubr.msk.f32.vlgmr.msra.gmra.mrb[4].mxu1 %vm387_vm2, %v622_v10 }
 0x3bd   : > { %v1601_v13 = vpop.eup %1600  ;;  %1480 = vmatpush3.msra.mxu1 %v1984_v7  ;;  %1481 = vmatprep.mubr.msk.f32.mxu1 %vm1787_vm0, %v1788_v1 }
 0x3be   : > { %v638_v14 = vrot.slane %v624_v11, %v2028_v52  ;;  %v639_v15 = vcombine.high %v631_v12, %v631_v12  ;;  %v647_v16 = vrot.slane %v631_v12, %v2028_v52  ;;  %v845_v17 = vmul.f32 %v1601_v13, %v1593_v42  ;;  %1489 = vmatprep.subr.mxu1 %v1788_v1 }
 0x3c0   : > { %v640_v18 = vcombine.high %v638_v14, %v638_v14  ;;  %v654_v19 = vrot.slane %v638_v14, %v2028_v52  ;;  %v661_v20 = vrot.slane %v639_v15, %v2028_v52  ;;  %v669_v21 = vcombine.high %v647_v16, %v647_v16  ;;  %681 = vst.msk [vmem:[%s2041_s10 + $0x1] sm:$0x1] %vm457_vm3, %v647_v16 }
 0x3c1   : > { %1482 = vmatmul.mubr.msk.f32.vlgmr.msra.gmra.mrb[6].mxu1 %vm387_vm2, %v845_v17  ;;  %v1603_v22 = vpop.eup %1602  ;;  %v847_v23 = vcombine.high %v845_v17, %v845_v17  ;;  %v854_v24 = vrot.slane %v845_v17, %v2028_v52 }
 0x3c2   : > { %1490 = vmatpush3.msra.mxu1 %v1984_v7  ;;  %1491 = vmatprep.mubr.msk.f32.mxu1 %vm1787_vm0, %v1788_v1  ;;  %v668_v25 = vrot.slane %v640_v18, %v2028_v52  ;;  %v670_v26 = vcombine.high %v654_v19, %v654_v19  ;;  %v671_v27 = vcombine.high %v661_v20, %v661_v20 }
 0x3c3   : > { %682 = vst.msk [vmem:[%s2041_s10 + $0x5] sm:$0x1] %vm457_vm3, %v661_v20  ;;  %683 = vst.msk [vmem:[%s2041_s10 + $0x9] sm:$0x1] %vm457_vm3, %v669_v21  ;;  %v1068_v28 = vmul.f32 %v1603_v22, %v2024_v44  ;;  %v861_v29 = vrot.slane %v847_v23, %v2028_v52  ;;  %v862_v7 = vcombine.high %v854_v24, %v854_v24 }
 0x3c4   : > { %685 = vst.msk [vmem:[%s2041_s10 + $0x11] sm:$0x1] %vm457_vm3, %v654_v19  ;;  %v870_v30 = vrot.slane %v854_v24, %v2028_v52  ;;  %v672_v1 = vcombine.high %v668_v25, %v668_v25  ;;  %684 = vst.msk [vmem:[%s2041_s10 + $0xd] sm:$0x1] %vm457_vm3, %v671_v27 }
 0x3c5   : > { %686 = vst.msk [vmem:[%s2041_s10 + $0x15] sm:$0x1] %vm457_vm3, %v668_v25  ;;  %687 = vst.msk [vmem:[%s2041_s10 + $0x19] sm:$0x1] %vm457_vm3, %v670_v26  ;;  %v1070_v31 = vcombine.high %v1068_v28, %v1068_v28  ;;  %v1077_v32 = vrot.slane %v1068_v28, %v2028_v52  ;;  %1492 = vmatmul.mubr.msk.f32.vlgmr.msra.gmra.mrb[8].mxu1 %vm387_vm2, %v1068_v28  ;;  %v863_v33 = vcombine.high %v861_v29, %v861_v29 }
 0x3c6   : > { %v877_v34 = vrot.slane %v861_v29, %v2028_v52  ;;  %v884_v35 = vrot.slane %v862_v7, %v2028_v52  ;;  %v892_v36 = vcombine.high %v870_v30, %v870_v30  ;;  %904 = vst.msk [vmem:[%s2041_s10 + $0x2] sm:$0x1] %vm457_vm3, %v870_v30  ;;  %688 = vst.msk [vmem:[%s2041_s10 + $0x1d] sm:$0x1] %vm457_vm3, %v672_v1 }
 0x3c7   : > { %v1084_v37 = vrot.slane %v1070_v31, %v2028_v52  ;;  %v1085_v38 = vcombine.high %v1077_v32, %v1077_v32  ;;  %v1093_v39 = vrot.slane %v1077_v32, %v2028_v52  ;;  %v891_v40 = vrot.slane %v863_v33, %v2028_v52 }
 0x3c8   : > { %v893_v41 = vcombine.high %v877_v34, %v877_v34  ;;  %v894_v42 = vcombine.high %v884_v35, %v884_v35  ;;  %905 = vst.msk [vmem:[%s2041_s10 + $0x6] sm:$0x1] %vm457_vm3, %v884_v35  ;;  %906 = vst.msk [vmem:[%s2041_s10 + $0xa] sm:$0x1] %vm457_vm3, %v892_v36 }
 0x3c9   : > { %908 = vst.msk [vmem:[%s2041_s10 + $0x12] sm:$0x1] %vm457_vm3, %v877_v34  ;;  %v1086_v43 = vcombine.high %v1084_v37, %v1084_v37  ;;  %v1100_v44 = vrot.slane %v1084_v37, %v2028_v52  ;;  %v1107_v45 = vrot.slane %v1085_v38, %v2028_v52  ;;  %v1115_v46 = vcombine.high %v1093_v39, %v1093_v39 }
 0x3ca   : > { %1127 = vst.msk [vmem:[%s2041_s10 + $0x3] sm:$0x1] %vm457_vm3, %v1093_v39  ;;  %v895_v47 = vcombine.high %v891_v40, %v891_v40  ;;  %907 = vst.msk [vmem:[%s2041_s10 + $0xe] sm:$0x1] %vm457_vm3, %v894_v42 }
 0x3cb   : > { %909 = vst.msk [vmem:[%s2041_s10 + $0x16] sm:$0x1] %vm457_vm3, %v891_v40  ;;  %910 = vst.msk [vmem:[%s2041_s10 + $0x1a] sm:$0x1] %vm457_vm3, %v893_v41  ;;  %v1114_v48 = vrot.slane %v1086_v43, %v2028_v52  ;;  %v1116_v49 = vcombine.high %v1100_v44, %v1100_v44  ;;  %v1117_v50 = vcombine.high %v1107_v45, %v1107_v45 }
 0x3cc   : > { %1128 = vst.msk [vmem:[%s2041_s10 + $0x7] sm:$0x1] %vm457_vm3, %v1107_v45  ;;  %1129 = vst.msk [vmem:[%s2041_s10 + $0xb] sm:$0x1] %vm457_vm3, %v1115_v46 }
 0x3cd   : > { %1131 = vst.msk [vmem:[%s2041_s10 + $0x13] sm:$0x1] %vm457_vm3, %v1100_v44  ;;  %911 = vst.msk [vmem:[%s2041_s10 + $0x1e] sm:$0x1] %vm457_vm3, %v895_v47  ;;  %v1118_v51 = vcombine.high %v1114_v48, %v1114_v48 }
 0x3ce   : > { %1130 = vst.msk [vmem:[%s2041_s10 + $0xf] sm:$0x1] %vm457_vm3, %v1117_v50  ;;  %1132 = vst.msk [vmem:[%s2041_s10 + $0x17] sm:$0x1] %vm457_vm3, %v1114_v48 }
 0x3cf   : > { %1133 = vst.msk [vmem:[%s2041_s10 + $0x1b] sm:$0x1] %vm457_vm3, %v1116_v49  ;;  %1134 = vst.msk [vmem:[%s2041_s10 + $0x1f] sm:$0x1] %vm457_vm3, %v1118_v51 }
 0x41d   : > { %v534_v52 = vpop.f32.mrb[2].mxu1 }
 0x41e   : > { %v1463_v53 = vpop.f32.mrb[3].mxu1 }
 0x48f   : > { %v757_v54 = vpop.f32.mrb[4].mxu1 }
 0x490   : > { %1208 = vrot.lane.b32.xlu0 %v757_v54, %s1789_s20  ;;  %v1473_v55 = vpop.f32.mrb[5].mxu1 }
 0x491   : > { %1675 = shalt.err (!%p1672_p5)
}
 0x492   : > { %s1676_s20 = scalar_lea.hbm %s2143_s26, 512  ;;  %s1680_s11 = scalar_lea.hbm %s2234_s3, 1024 }
 0x493   : > { %p1677_p9 = scmp.ne.s32.totalorder %s2143_s26, %s1676_s20  ;;  %p1681_p7 = scmp.lt.u32.totalorder %s2143_s26, %s2234_s3 }
 0x494   : > { %p1682_p3 = scmp.lt.u32.totalorder %s1680_s11, %s1676_s20  ;;  %p1684_p4 = scmp.lt.u32.totalorder %s1676_s20, %s2143_s26 }
 0x495   : > { %p1678_p1 = pnand %p1677_p9, %p1912_p10 }
 0x496   : > { %p1683_p13 = por %p1682_p3, %p1681_p7 }
 0x497   : > { %p1679_p2 = pneg %p1678_p1 }
 0x498   : > { %p1685_p6 = por %p1684_p4, %p1683_p13 }
 0x49a   : > { %p1686_p8 = pnand %p1685_p6, %p1679_p2 }
 0x49c   : > { %1689 = shalt.err (!%p1686_p8)
}
 0x49d   : > { %s1794_s8 = smov 4   ;;  %v980_v56 = vpop.f32.mrb[6].mxu1  ;;  %vm1220_vm4 = vcmask 523264   ;;  %s1416_s21 = sshll.u32 %s1772_s15, 7  ;;  %vm1222_vm5 = vcmask 785408  }
 0x49e   : > { %1507 = dma.vmem_to_hbm [thread:$0]  (%p1912_p10), %s2145_s18, 512, %s2143_s26, %s1231_s7, %s1791_s24, %s1791_s24, %s1794_s8   ;;  %v1483_v57 = vpop.f32.mrb[7].mxu1 }
 0x49f   : > { %1212 = vrot.lane.b32.xlu1 %v980_v56, %s1791_s24  ;;  %v1203_v58 = vpop.f32.mrb[8].mxu1  ;;  %s220_s27 = scalar_lea.vmem [#allocation7], %s1397_s25  ;;  %s2182_s26 = scalar_lea.hbm %s2233_s2, %s1416_s21 }
 0x4a0   : > { %v1493_v59 = vpop.f32.mrb[9].mxu1  ;;  %s1245_s4 = sshll.u32 %s220_s27, 4  ;;  %s1226_s15 = scalar_lea.sflag [#allocation4], %s1965_s19  ;;  %s2184_s4 = int_to_ptr.vmem [resolvable:$true] %s1245_s4 }
 0x4a1   : > { %s1690_s25 = scalar_lea.vmem %s2184_s4, 128 }
 0x4a2   : > { %p1691_p12 = scmp.ne.s32.totalorder %s2184_s4, %s1690_s25 }
 0x4a3   : > { %1216 = vrot.lane.b32.xlu1 %v1203_v58, %s1790_s22  ;;  %s1795_s22 = smov [#allocation7]  }
 0x4a4   : > { %p1692_p11 = pnand %p1691_p12, %p1912_p10  ;;  %s1694_s7 = sshll.u32 %s1795_s22, 4  ;;  %s1695_s7 = int_to_ptr.vmem [resolvable:$false] %s1694_s7 }
 0x4a5   : > { %s1696_s20 = scalar_lea.vmem %s1695_s7, 256  ;;  %p1697_p5 = scmp.lt.s32.totalorder %s2184_s4, %s1695_s7 }
 0x4a6   : > { %p1693_p0 = pneg %p1692_p11  ;;  %p1698_p9 = scmp.lt.s32.totalorder %s1696_s20, %s1690_s25 }
 0x4a8   : > { %p1699_p1 = por %p1698_p9, %p1697_p5 }
 0x4aa   : > { %p1700_p2 = pnand %p1699_p1, %p1693_p0 }
 0x502   : > { %v1209_v60 = vpop.permute.xlu0 %1208 }
 0x503   : > { %v1219_v62 = vsel %vm237_vm1, %v534_v52, %v1209_v60 }
 0x511   : > { %v1213_v61 = vpop.permute.xlu1 %1212 }
 0x512   : > { %v1221_v63 = vsel %vm1220_vm4, %v1219_v62, %v1213_v61 }
 0x515   : > { %v1217_v0 = vpop.permute.xlu1 %1216 }
 0x516   : > { %v1223_v2 = vsel %vm1222_vm5, %v1221_v63, %v1217_v0 }
 0x517   : > { %1224 = vst [vmem:[%s220_s27] sm:$0xff] %v1223_v2 }
 0x518   : > { %1703 = shalt.err (!%p1700_p2)
}
 0x519   : > { %s1704_s19 = scalar_lea.hbm %s2182_s26, 128  ;;  %s1708_s11 = scalar_lea.hbm %s2233_s2, 256 }
 0x51a   : > { %p1705_p7 = scmp.ne.s32.totalorder %s2182_s26, %s1704_s19  ;;  %p1709_p4 = scmp.lt.u32.totalorder %s2182_s26, %s2233_s2 }
 0x51b   : > { %p1710_p6 = scmp.lt.u32.totalorder %s1708_s11, %s1704_s19  ;;  %p1712_p12 = scmp.lt.u32.totalorder %s1704_s19, %s2182_s26 }
 0x51c   : > { %p1706_p3 = pnand %p1705_p7, %p1912_p10 }
 0x51d   : > { %p1711_p8 = por %p1710_p6, %p1709_p4 }
 0x51e   : > { %p1707_p13 = pneg %p1706_p3 }
 0x51f   : > { %p1713_p11 = por %p1712_p12, %p1711_p8 }
 0x521   : > { %p1714_p0 = pnand %p1713_p11, %p1707_p13 }
 0x523   : > { %1717 = shalt.err (!%p1714_p0)
}
 0x524   : > { %1506 = dma.vmem_to_hbm [thread:$0]  (%p1912_p10), %s2184_s4, 128, %s2182_s26, %s1226_s15  }
 0x525 PF: > { %s1275_s8 = sand.u32 1, %s1760_s12   ;;  %p2252_p5 = scmp.ne.s32.totalorder %s2242_s23, 0 }
 0x526   : > { %p2253_p9 = scmp.ge.s32.totalorder %s1780_s17, 2  ;;  %s1276_s21 = scalar_lea.sflag [#allocation4], %s1275_s8 }
 0x528   : > { %p1519_p1 = pnand %p2253_p9, %p2252_p5 }
 0x52a   : > { %1751 = dma.done.wait (!%p1519_p1), %s1276_s21, 128  }
 0x52b   : > { %1753 = vsyncadd (!%p1519_p1), %s1276_s21, 4294967168  ;;  %s1285_s27 = scalar_lea.sflag [#allocation9], %s1275_s8 }
 0x52c   : > { %1755 = dma.done.wait (!%p1519_p1), %s1285_s27, 512  }
 0x52d   : > { %1757 = vsyncadd (!%p1519_p1), %s1285_s27, 4294966784  ;;  %s24_s17 = sadd.s32 1, %s1780_s17   ;;  %s2254_s12 = smov %s1764_s13 }
 0x52e   : > { %p21_p2 = scmp.ge.s32.totalorder %s24_s17, 4   ;;  %s2255_s13 = smov %s1768_s14 }
 0x52f   : > { %s2256_s14 = smov %s1921_s5  ;;  %s2257_s15 = smov %s1776_s16 }
 0x530   : > { %s2258_s16 = smov %s2260_s28  ;;  %23 = sbr.rel (!%p21_p2) target bundleno = 9 (0x9), region = 95 }
 0x537   :  { %1290 = vsyncpa [#allocation3], 1 }
 0x538   :  { %1292 = vsyncpa [#allocation3 + $0x1], 1 }
 0x539   :  { %1293 = vsyncpa [#allocation6], 1 }
 0x53a   :  { %1294 = vsyncpa [#allocation4], 1 }
 0x53b   :  { %1296 = vsyncpa [#allocation4 + $0x1], 1 }
 0x53c   :  { %1297 = vsyncpa [#allocation9], 1 }
 0x53d   :  { %1299 = vsyncpa [#allocation9 + $0x1], 1 }

</bundles_post_ra>
